<compile_context>
chip_gen: v6e
topology: v6e:2x2x1
jax: 0.10.0
libtpu: 0.0.40
codegen_flags: <defaults>
</compile_context>

<pallas_src>
import math

import jax
import jax.numpy as jnp
from jax.experimental import pallas as pl
from jax.experimental.pallas import tpu as pltpu

# ---------------- small deterministic config (consistent with MidiBert) ----------------
HIDDEN = 32
NUM_HEADS = 4
HEAD_DIM = HIDDEN // NUM_HEADS
INTERMEDIATE = 64
NUM_LAYERS = 2
SPLIT_LAYER = 1
EMB_SIZES = [256, 256, 256, 256]
N_TOKENS = [4, 16, 12, 10]        # sizes of e2w['Bar'/'Position'/'Pitch'/'Duration']
MAX_POS = 16
LN_EPS = 1e-12
PAD_TOK = 16                      # embedding tables padded to a common row count


# -------------------------------- in-kernel helpers ------------------------------------
def _layernorm(x, g, b):
    mu = jnp.mean(x, axis=-1, keepdims=True)
    d = x - mu
    var = jnp.mean(d * d, axis=-1, keepdims=True)
    return d * jax.lax.rsqrt(var + LN_EPS) * g + b


def _gelu_exact(x):                               # HF BERT uses exact (erf) GELU
    return 0.5 * x * (1.0 + jax.lax.erf(x * (1.0 / math.sqrt(2.0))))


def _bert_layer(x, li, B, S, neg_full,
                wqkv_ref, bqkv_ref, wo_ref, wi_ref, wo2_ref, bi_ref, vecs_ref):
    """One BERT encoder layer on VMEM-resident values. x: (B*S, H) f32."""
    BS, H = x.shape
    dh = HEAD_DIM

    wqkv = wqkv_ref[li]           # (H, 3H)  bf16  (1/sqrt(dh) folded into q cols)
    bqkv = bqkv_ref[li]           # (1, 3H)  f32
    wo = wo_ref[li]               # (H, H)   bf16
    wi = wi_ref[li]               # (H, I)   bf16
    wo2 = wo2_ref[li]             # (I, H)   bf16
    bi = bi_ref[li]               # (1, I)   f32
    vecs = vecs_ref[li]           # (6, H)   f32
    bo = vecs[0:1, :]
    ln1g = vecs[1:2, :]
    ln1b = vecs[2:3, :]
    bo2 = vecs[3:4, :]
    ln2g = vecs[4:5, :]
    ln2b = vecs[5:6, :]

    # fused Q/K/V projection: one (BS,H) x (H,3H) matmul
    qkv = jnp.dot(x.astype(jnp.bfloat16), wqkv,
                  preferred_element_type=jnp.float32) + bqkv          # (BS, 3H) f32
    qkv3 = qkv.reshape(B, S, 3 * H)                                   # free split of major dim

    # multi-head attention: per head, B-batched QK^T / PV products; head outputs are
    # accumulated directly through the matching rows of W_o (no concatenates anywhere).
    attn = None
    for h in range(NUM_HEADS):
        c0 = h * dh
        qh = qkv3[:, :, c0:c0 + dh].astype(jnp.bfloat16)              # (B, S, dh)
        kh = qkv3[:, :, H + c0:H + c0 + dh].astype(jnp.bfloat16)
        vh = qkv3[:, :, 2 * H + c0:2 * H + c0 + dh].astype(jnp.bfloat16)

        s = jax.lax.dot_general(qh, kh, (((2,), (2,)), ((0,), (0,))),
                                preferred_element_type=jnp.float32)   # (B, S, S)
        s = s + neg_full                                              # additive key mask
        s = s - jnp.max(s, axis=-1, keepdims=True)
        p = jnp.exp(s)
        p = p * pl.reciprocal(jnp.sum(p, axis=-1, keepdims=True), approx=True)

        ctx = jax.lax.dot_general(p.astype(jnp.bfloat16), vh,
                                  (((2,), (1,)), ((0,), (0,))),
                                  preferred_element_type=jnp.float32)  # (B, S, dh)
        part = jnp.dot(ctx.reshape(BS, dh).astype(jnp.bfloat16),
                       wo[c0:c0 + dh, :],
                       preferred_element_type=jnp.float32)             # (BS, H)
        attn = part if attn is None else attn + part

    attn_out = attn + bo
    x1 = _layernorm(attn_out + x, ln1g, ln1b)
    hmid = _gelu_exact(jnp.dot(x1.astype(jnp.bfloat16), wi,
                               preferred_element_type=jnp.float32) + bi)
    ffn = jnp.dot(hmid.astype(jnp.bfloat16), wo2,
                  preferred_element_type=jnp.float32) + bo2
    return _layernorm(ffn + x1, ln2g, ln2b)


# ---------------------------------- fused kernel ----------------------------------------
def _fused_midibert_kernel(ids_ref, mask_ref, emb_fold_ref, posbias_ref, eln_ref,
                           wqkv_ref, bqkv_ref, wo_ref, wi_ref, wo2_ref, bi_ref,
                           vecs_ref, out_ref):
    B, S = mask_ref.shape
    BS, n_cls = ids_ref.shape
    n_slots = emb_fold_ref.shape[0]                 # 4 * PAD_TOK

    ids = ids_ref[...]                              # (BS, 4) int32

    # ---- front (edge): embeddings folded through in_linear -> ONE one-hot matmul ----
    lane = jax.lax.broadcasted_iota(jnp.int32, (BS, n_slots), 1)   # hoisted, single iota
    onehot = jnp.zeros((BS, n_slots), jnp.float32)
    for i in range(n_cls):
        onehot = onehot + (lane == (ids[:, i:i + 1] + i * PAD_TOK)).astype(jnp.float32)
    emb_linear = jnp.dot(onehot.astype(jnp.bfloat16), emb_fold_ref[...],
                         preferred_element_type=jnp.float32)        # (BS, H)

    # BertEmbeddings(inputs_embeds): + in_b + pos emb + token-type(0) emb (pre-tiled), LN
    eln = eln_ref[...]
    x = _layernorm(emb_linear + posbias_ref[...], eln[0:1, :], eln[1:2, :])

    # extended additive attention mask, materialized ONCE: (B, S_q, S_k)
    neg_bias = (1.0 - mask_ref[...]) * (-10000.0)                    # (B, S)
    neg_full = jnp.broadcast_to(neg_bias.reshape(B, 1, S), (B, S, S))

    # ---- front encoder layers [0, split_layer) ----
    for li in range(SPLIT_LAYER):
        x = _bert_layer(x, li, B, S, neg_full,
                        wqkv_ref, bqkv_ref, wo_ref, wi_ref, wo2_ref, bi_ref, vecs_ref)

    # ---- quantize_per_tensor(scale=1.0, zero_point=0, qint8) -> handoff -> dequantize ----
    # round-half-to-even + clamp to int8 range; with scale=1 dequant == rounded/clamped.
    x = jnp.clip(jnp.round(x), -128.0, 127.0)

    # ---- back (cloud) encoder layers [split_layer, L) ----
    for li in range(SPLIT_LAYER, NUM_LAYERS):
        x = _bert_layer(x, li, B, S, neg_full,
                        wqkv_ref, bqkv_ref, wo_ref, wi_ref, wo2_ref, bi_ref, vecs_ref)

    out_ref[...] = x


# ------------------------------------ model glue ---------------------------------------
def pack_params(params, B, S):
    """One-time parameter packing (runs outside the jitted forward)."""
    H = HIDDEN
    scale = 1.0 / math.sqrt(HEAD_DIM)

    # fold each token-class embedding table (*sqrt(256)) through its in_linear slice
    folds = []
    off = 0
    for i in range(4):
        tbl = params["emb"][i] * math.sqrt(EMB_SIZES[i])               # (n_tok_i, 256)
        w_i = params["in_w"][off:off + EMB_SIZES[i], :]                # (256, H)
        off += EMB_SIZES[i]
        fold = tbl @ w_i                                               # (n_tok_i, H)
        fold = jnp.pad(fold, ((0, PAD_TOK - fold.shape[0]), (0, 0)))
        folds.append(fold)
    emb_fold = jnp.concatenate(folds, axis=0).astype(jnp.bfloat16)     # (4*PAD_TOK, H)

    # in_linear bias + position emb + token-type(0) emb, pre-tiled to (B*S, H)
    posbias = params["pos_emb"][:S] + params["type_emb"][0][None, :]   # (S, H)
    posbias = jnp.tile(posbias, (B, 1)) + params["in_b"][None, :]      # (BS, H)

    eln = jnp.stack([params["emb_ln_g"], params["emb_ln_b"]], axis=0)  # (2, H)

    wqkv_l, bqkv_l, wo_l, wi_l, wo2_l, bi_l, vecs_l = [], [], [], [], [], [], []
    for lp in params["layers"]:
        wq = lp["wq"] * scale                                          # fold 1/sqrt(dh)
        bq = lp["bq"] * scale
        wqkv_l.append(jnp.concatenate([wq, lp["wk"], lp["wv"]], axis=1).astype(jnp.bfloat16))
        bqkv_l.append(jnp.concatenate([bq, lp["bk"], lp["bv"]])[None, :])
        wo_l.append(lp["wo"].astype(jnp.bfloat16))
        wi_l.append(lp["wi"].astype(jnp.bfloat16))
        wo2_l.append(lp["wo2"].astype(jnp.bfloat16))
        bi_l.append(lp["bi"][None, :])
        vecs_l.append(jnp.stack([lp["bo"], lp["ln1_g"], lp["ln1_b"],
                                 lp["bo2"], lp["ln2_g"], lp["ln2_b"]], axis=0))
    return dict(
        emb_fold=emb_fold, posbias=posbias, eln=eln,
        wqkv=jnp.stack(wqkv_l),     # (L, H, 3H) bf16
        bqkv=jnp.stack(bqkv_l),     # (L, 1, 3H) f32
        wo=jnp.stack(wo_l),         # (L, H, H)  bf16
        wi=jnp.stack(wi_l),         # (L, H, I)  bf16
        wo2=jnp.stack(wo2_l),       # (L, I, H)  bf16
        bi=jnp.stack(bi_l),         # (L, 1, I)  f32
        vecs=jnp.stack(vecs_l),     # (L, 6, H)  f32
    )


@jax.jit
def dist_midibert_quant_forward(packed, input_ids, attn_mask):
    B, S, n_cls = input_ids.shape
    BS = B * S

    ids2d = input_ids.reshape(BS, n_cls).astype(jnp.int32)
    mask = attn_mask.astype(jnp.float32).reshape(B, S)

    operands = [
        ids2d, mask,
        packed["emb_fold"], packed["posbias"], packed["eln"],
        packed["wqkv"], packed["bqkv"], packed["wo"], packed["wi"],
        packed["wo2"], packed["bi"], packed["vecs"],
    ]

    out2d = pl.pallas_call(
        _fused_midibert_kernel,
        out_shape=jax.ShapeDtypeStruct((BS, HIDDEN), jnp.float32),
        # gridless, whole-model-in-VMEM (total footprint << 1 MiB on v5e/v6e/v7x)
        in_specs=[pl.BlockSpec(memory_space=pltpu.MemorySpace.VMEM)] * len(operands),
        out_specs=pl.BlockSpec(memory_space=pltpu.MemorySpace.VMEM),
    )(*operands)
    return out2d.reshape(B, S, HIDDEN)                                  # last_hidden_state


def init_params(key):
    keys = iter(jax.random.split(key, 256))

    def nrm(shape, scale=0.02):
        return jax.random.normal(next(keys), shape, dtype=jnp.float32) * scale

    params = {
        "emb": [nrm((N_TOKENS[i], EMB_SIZES[i])) for i in range(4)],
        "in_w": nrm((sum(EMB_SIZES), HIDDEN)),
        "in_b": jnp.zeros((HIDDEN,), jnp.float32),
        "pos_emb": nrm((MAX_POS, HIDDEN)),
        "type_emb": nrm((2, HIDDEN)),
        "emb_ln_g": jnp.ones((HIDDEN,), jnp.float32),
        "emb_ln_b": jnp.zeros((HIDDEN,), jnp.float32),
        "layers": [],
    }
    for _ in range(NUM_LAYERS):
        params["layers"].append(dict(
            wq=nrm((HIDDEN, HIDDEN)), bq=jnp.zeros((HIDDEN,), jnp.float32),
            wk=nrm((HIDDEN, HIDDEN)), bk=jnp.zeros((HIDDEN,), jnp.float32),
            wv=nrm((HIDDEN, HIDDEN)), bv=jnp.zeros((HIDDEN,), jnp.float32),
            wo=nrm((HIDDEN, HIDDEN)), bo=jnp.zeros((HIDDEN,), jnp.float32),
            ln1_g=jnp.ones((HIDDEN,), jnp.float32), ln1_b=jnp.zeros((HIDDEN,), jnp.float32),
            wi=nrm((HIDDEN, INTERMEDIATE)), bi=jnp.zeros((INTERMEDIATE,), jnp.float32),
            wo2=nrm((INTERMEDIATE, HIDDEN)), bo2=jnp.zeros((HIDDEN,), jnp.float32),
            ln2_g=jnp.ones((HIDDEN,), jnp.float32), ln2_b=jnp.zeros((HIDDEN,), jnp.float32),
        ))
    return params


if __name__ == "__main__":
    key = jax.random.PRNGKey(0)
    pkey, ikey = jax.random.split(key)
    params = init_params(pkey)

    B, S = 2, 8
    packed = pack_params(params, B, S)              # one-time packing, outside the jit

    id_cols = []
    for i in range(4):
        ikey, sub = jax.random.split(ikey)
        id_cols.append(jax.random.randint(sub, (B, S), 0, N_TOKENS[i], dtype=jnp.int32))
    input_ids = jnp.stack(id_cols, axis=-1)         # (B, S, 4): Bar/Pos/Pitch/Dur
    attn_mask = jnp.ones((B, S), jnp.float32).at[1, S - 2:].set(0.0)

    out = dist_midibert_quant_forward(packed, input_ids, attn_mask)
    jax.block_until_ready(out)
    assert out.shape == (B, S, HIDDEN) and out.dtype == jnp.float32
    assert bool(jnp.all(jnp.isfinite(out)))
    print("KERNEL_OK")
</pallas_src>

<mosaic_0001>
module attributes {stable_mosaic.version = 11 : i64} {
  func.func @_fused_midibert_kernel(%arg0: memref<16x4xi32, #tpu.memory_space<vmem>>, %arg1: memref<2x8xf32, #tpu.memory_space<vmem>>, %arg2: memref<64x32xbf16, #tpu.memory_space<vmem>>, %arg3: memref<16x32xf32, #tpu.memory_space<vmem>>, %arg4: memref<2x32xf32, #tpu.memory_space<vmem>>, %arg5: memref<2x32x96xbf16, #tpu.memory_space<vmem>>, %arg6: memref<2x1x96xf32, #tpu.memory_space<vmem>>, %arg7: memref<2x32x32xbf16, #tpu.memory_space<vmem>>, %arg8: memref<2x32x64xbf16, #tpu.memory_space<vmem>>, %arg9: memref<2x64x32xbf16, #tpu.memory_space<vmem>>, %arg10: memref<2x1x64xf32, #tpu.memory_space<vmem>>, %arg11: memref<2x6x32xf32, #tpu.memory_space<vmem>>, %arg12: memref<16x32xf32, #tpu.memory_space<vmem>>) attributes {dimension_semantics = [], scalar_prefetch = 0 : i64, scratch_operands = 0 : i64, tpu.core_type = #tpu.core_type<tc>} {
    %c0 = arith.constant 0 : index
    %c0_0 = arith.constant 0 : index
    %0 = vector.load %arg0[%c0, %c0_0] : memref<16x4xi32, #tpu.memory_space<vmem>>, vector<16x4xi32>
    %1 = tpu.iota {dimensions = array<i32: 1>} : vector<16x64xi32>
    %cst = arith.constant 0.000000e+00 : f32
    %2 = vector.broadcast %cst : f32 to vector<16x64xf32>
    %3 = vector.extract_strided_slice %0 {offsets = [0, 0], sizes = [16, 1], strides = [1, 1]} : vector<16x4xi32> to vector<16x1xi32>
    %c0_i32 = arith.constant 0 : i32
    %4 = vector.broadcast %c0_i32 : i32 to vector<16x1xi32>
    %5 = arith.addi %3, %4 : vector<16x1xi32>
    %6 = vector.broadcast %5 : vector<16x1xi32> to vector<16x64xi32>
    %7 = arith.cmpi eq, %1, %6 : vector<16x64xi32>
    %8 = arith.extui %7 : vector<16x64xi1> to vector<16x64xi32>
    %9 = arith.sitofp %8 : vector<16x64xi32> to vector<16x64xf32>
    %10 = arith.addf %2, %9 : vector<16x64xf32>
    %11 = vector.extract_strided_slice %0 {offsets = [0, 1], sizes = [16, 1], strides = [1, 1]} : vector<16x4xi32> to vector<16x1xi32>
    %c16_i32 = arith.constant 16 : i32
    %12 = vector.broadcast %c16_i32 : i32 to vector<16x1xi32>
    %13 = arith.addi %11, %12 : vector<16x1xi32>
    %14 = vector.broadcast %13 : vector<16x1xi32> to vector<16x64xi32>
    %15 = arith.cmpi eq, %1, %14 : vector<16x64xi32>
    %16 = arith.extui %15 : vector<16x64xi1> to vector<16x64xi32>
    %17 = arith.sitofp %16 : vector<16x64xi32> to vector<16x64xf32>
    %18 = arith.addf %10, %17 : vector<16x64xf32>
    %19 = vector.extract_strided_slice %0 {offsets = [0, 2], sizes = [16, 1], strides = [1, 1]} : vector<16x4xi32> to vector<16x1xi32>
    %c32_i32 = arith.constant 32 : i32
    %20 = vector.broadcast %c32_i32 : i32 to vector<16x1xi32>
    %21 = arith.addi %19, %20 : vector<16x1xi32>
    %22 = vector.broadcast %21 : vector<16x1xi32> to vector<16x64xi32>
    %23 = arith.cmpi eq, %1, %22 : vector<16x64xi32>
    %24 = arith.extui %23 : vector<16x64xi1> to vector<16x64xi32>
    %25 = arith.sitofp %24 : vector<16x64xi32> to vector<16x64xf32>
    %26 = arith.addf %18, %25 : vector<16x64xf32>
    %27 = vector.extract_strided_slice %0 {offsets = [0, 3], sizes = [16, 1], strides = [1, 1]} : vector<16x4xi32> to vector<16x1xi32>
    %c48_i32 = arith.constant 48 : i32
    %28 = vector.broadcast %c48_i32 : i32 to vector<16x1xi32>
    %29 = arith.addi %27, %28 : vector<16x1xi32>
    %30 = vector.broadcast %29 : vector<16x1xi32> to vector<16x64xi32>
    %31 = arith.cmpi eq, %1, %30 : vector<16x64xi32>
    %32 = arith.extui %31 : vector<16x64xi1> to vector<16x64xi32>
    %33 = arith.sitofp %32 : vector<16x64xi32> to vector<16x64xf32>
    %34 = arith.addf %26, %33 : vector<16x64xf32>
    %35 = arith.truncf %34 : vector<16x64xf32> to vector<16x64xbf16>
    %c0_1 = arith.constant 0 : index
    %c0_2 = arith.constant 0 : index
    %36 = vector.load %arg2[%c0_1, %c0_2] : memref<64x32xbf16, #tpu.memory_space<vmem>>, vector<64x32xbf16>
    %cst_3 = arith.constant dense<0.000000e+00> : vector<16x32xf32>
    %37 = tpu.matmul %35, %36, %cst_3 {dimension_numbers = #tpu.dot_dimension_numbers<[1], [0], [0], [1], [0, 0, 1, 1], [], []>} : vector<16x64xbf16>, vector<64x32xbf16>, vector<16x32xf32> -> vector<16x32xf32>
    %c0_4 = arith.constant 0 : index
    %c0_5 = arith.constant 0 : index
    %38 = vector.load %arg4[%c0_4, %c0_5] : memref<2x32xf32, #tpu.memory_space<vmem>>, vector<2x32xf32>
    %c0_6 = arith.constant 0 : index
    %c0_7 = arith.constant 0 : index
    %39 = vector.load %arg3[%c0_6, %c0_7] : memref<16x32xf32, #tpu.memory_space<vmem>>, vector<16x32xf32>
    %40 = arith.addf %37, %39 : vector<16x32xf32>
    %41 = vector.extract_strided_slice %38 {offsets = [0, 0], sizes = [1, 32], strides = [1, 1]} : vector<2x32xf32> to vector<1x32xf32>
    %42 = vector.extract_strided_slice %38 {offsets = [1, 0], sizes = [1, 32], strides = [1, 1]} : vector<2x32xf32> to vector<1x32xf32>
    %cst_8 = arith.constant dense<0.000000e+00> : vector<16xf32>
    %43 = vector.multi_reduction <add>, %40, %cst_8 [1] : vector<16x32xf32> to vector<16xf32>
    %44 = vector.shape_cast %43 : vector<16xf32> to vector<16x1xf32>
    %cst_9 = arith.constant 3.200000e+01 : f32
    %45 = vector.broadcast %cst_9 : f32 to vector<16x1xf32>
    %46 = arith.divf %44, %45 : vector<16x1xf32>
    %47 = vector.broadcast %46 : vector<16x1xf32> to vector<16x32xf32>
    %48 = arith.subf %40, %47 : vector<16x32xf32>
    %49 = arith.mulf %48, %48 : vector<16x32xf32>
    %cst_10 = arith.constant dense<0.000000e+00> : vector<16xf32>
    %50 = vector.multi_reduction <add>, %49, %cst_10 [1] : vector<16x32xf32> to vector<16xf32>
    %51 = vector.shape_cast %50 : vector<16xf32> to vector<16x1xf32>
    %cst_11 = arith.constant 3.200000e+01 : f32
    %52 = vector.broadcast %cst_11 : f32 to vector<16x1xf32>
    %53 = arith.divf %51, %52 : vector<16x1xf32>
    %cst_12 = arith.constant 9.99999996E-13 : f32
    %54 = vector.broadcast %cst_12 : f32 to vector<16x1xf32>
    %55 = arith.addf %53, %54 : vector<16x1xf32>
    %56 = math.rsqrt %55 : vector<16x1xf32>
    %57 = vector.broadcast %56 : vector<16x1xf32> to vector<16x32xf32>
    %58 = arith.mulf %48, %57 : vector<16x32xf32>
    %59 = vector.broadcast %41 : vector<1x32xf32> to vector<16x32xf32>
    %60 = arith.mulf %58, %59 : vector<16x32xf32>
    %61 = vector.broadcast %42 : vector<1x32xf32> to vector<16x32xf32>
    %62 = arith.addf %60, %61 : vector<16x32xf32>
    %c0_13 = arith.constant 0 : index
    %c0_14 = arith.constant 0 : index
    %63 = vector.load %arg1[%c0_13, %c0_14] : memref<2x8xf32, #tpu.memory_space<vmem>>, vector<2x8xf32>
    %cst_15 = arith.constant 1.000000e+00 : f32
    %64 = vector.broadcast %cst_15 : f32 to vector<2x8xf32>
    %65 = arith.subf %64, %63 : vector<2x8xf32>
    %cst_16 = arith.constant -1.000000e+04 : f32
    %66 = vector.broadcast %cst_16 : f32 to vector<2x8xf32>
    %67 = arith.mulf %65, %66 : vector<2x8xf32>
    %68 = vector.shape_cast %67 : vector<2x8xf32> to vector<2x1x8xf32>
    %69 = vector.shape_cast %68 : vector<2x1x8xf32> to vector<2x1x8xf32>
    %70 = vector.broadcast %69 : vector<2x1x8xf32> to vector<2x8x8xf32>
    %c0_17 = arith.constant 0 : index
    %c0_18 = arith.constant 0 : index
    %c0_19 = arith.constant 0 : index
    %71 = vector.load %arg5[%c0_17, %c0_18, %c0_19] : memref<2x32x96xbf16, #tpu.memory_space<vmem>>, vector<1x32x96xbf16>
    %72 = vector.shape_cast %71 : vector<1x32x96xbf16> to vector<32x96xbf16>
    %c0_20 = arith.constant 0 : index
    %c0_21 = arith.constant 0 : index
    %c0_22 = arith.constant 0 : index
    %73 = vector.load %arg6[%c0_20, %c0_21, %c0_22] : memref<2x1x96xf32, #tpu.memory_space<vmem>>, vector<1x1x96xf32>
    %74 = vector.shape_cast %73 : vector<1x1x96xf32> to vector<1x96xf32>
    %c0_23 = arith.constant 0 : index
    %c0_24 = arith.constant 0 : index
    %c0_25 = arith.constant 0 : index
    %75 = vector.load %arg7[%c0_23, %c0_24, %c0_25] : memref<2x32x32xbf16, #tpu.memory_space<vmem>>, vector<1x32x32xbf16>
    %76 = vector.shape_cast %75 : vector<1x32x32xbf16> to vector<32x32xbf16>
    %c0_26 = arith.constant 0 : index
    %c0_27 = arith.constant 0 : index
    %c0_28 = arith.constant 0 : index
    %77 = vector.load %arg8[%c0_26, %c0_27, %c0_28] : memref<2x32x64xbf16, #tpu.memory_space<vmem>>, vector<1x32x64xbf16>
    %78 = vector.shape_cast %77 : vector<1x32x64xbf16> to vector<32x64xbf16>
    %c0_29 = arith.constant 0 : index
    %c0_30 = arith.constant 0 : index
    %c0_31 = arith.constant 0 : index
    %79 = vector.load %arg9[%c0_29, %c0_30, %c0_31] : memref<2x64x32xbf16, #tpu.memory_space<vmem>>, vector<1x64x32xbf16>
    %80 = vector.shape_cast %79 : vector<1x64x32xbf16> to vector<64x32xbf16>
    %c0_32 = arith.constant 0 : index
    %c0_33 = arith.constant 0 : index
    %c0_34 = arith.constant 0 : index
    %81 = vector.load %arg10[%c0_32, %c0_33, %c0_34] : memref<2x1x64xf32, #tpu.memory_space<vmem>>, vector<1x1x64xf32>
    %82 = vector.shape_cast %81 : vector<1x1x64xf32> to vector<1x64xf32>
    %c0_35 = arith.constant 0 : index
    %c0_36 = arith.constant 0 : index
    %c0_37 = arith.constant 0 : index
    %83 = vector.load %arg11[%c0_35, %c0_36, %c0_37] : memref<2x6x32xf32, #tpu.memory_space<vmem>>, vector<1x6x32xf32>
    %84 = vector.shape_cast %83 : vector<1x6x32xf32> to vector<6x32xf32>
    %85 = vector.extract_strided_slice %84 {offsets = [0, 0], sizes = [1, 32], strides = [1, 1]} : vector<6x32xf32> to vector<1x32xf32>
    %86 = vector.extract_strided_slice %84 {offsets = [1, 0], sizes = [1, 32], strides = [1, 1]} : vector<6x32xf32> to vector<1x32xf32>
    %87 = vector.extract_strided_slice %84 {offsets = [2, 0], sizes = [1, 32], strides = [1, 1]} : vector<6x32xf32> to vector<1x32xf32>
    %88 = vector.extract_strided_slice %84 {offsets = [3, 0], sizes = [1, 32], strides = [1, 1]} : vector<6x32xf32> to vector<1x32xf32>
    %89 = vector.extract_strided_slice %84 {offsets = [4, 0], sizes = [1, 32], strides = [1, 1]} : vector<6x32xf32> to vector<1x32xf32>
    %90 = vector.extract_strided_slice %84 {offsets = [5, 0], sizes = [1, 32], strides = [1, 1]} : vector<6x32xf32> to vector<1x32xf32>
    %91 = arith.truncf %62 : vector<16x32xf32> to vector<16x32xbf16>
    %cst_38 = arith.constant dense<0.000000e+00> : vector<16x96xf32>
    %92 = tpu.matmul %91, %72, %cst_38 {dimension_numbers = #tpu.dot_dimension_numbers<[1], [0], [0], [1], [0, 0, 1, 1], [], []>} : vector<16x32xbf16>, vector<32x96xbf16>, vector<16x96xf32> -> vector<16x96xf32>
    %93 = vector.broadcast %74 : vector<1x96xf32> to vector<16x96xf32>
    %94 = arith.addf %92, %93 : vector<16x96xf32>
    %95 = vector.shape_cast %94 : vector<16x96xf32> to vector<2x8x96xf32>
    %96 = vector.extract_strided_slice %95 {offsets = [0, 0, 0], sizes = [2, 8, 8], strides = [1, 1, 1]} : vector<2x8x96xf32> to vector<2x8x8xf32>
    %97 = arith.truncf %96 : vector<2x8x8xf32> to vector<2x8x8xbf16>
    %98 = vector.extract_strided_slice %95 {offsets = [0, 0, 32], sizes = [2, 8, 8], strides = [1, 1, 1]} : vector<2x8x96xf32> to vector<2x8x8xf32>
    %99 = arith.truncf %98 : vector<2x8x8xf32> to vector<2x8x8xbf16>
    %100 = vector.extract_strided_slice %95 {offsets = [0, 0, 64], sizes = [2, 8, 8], strides = [1, 1, 1]} : vector<2x8x96xf32> to vector<2x8x8xf32>
    %101 = arith.truncf %100 : vector<2x8x8xf32> to vector<2x8x8xbf16>
    %cst_39 = arith.constant dense<0.000000e+00> : vector<2x8x8xf32>
    %102 = tpu.matmul %97, %99, %cst_39 {dimension_numbers = #tpu.dot_dimension_numbers<[2], [2], [1], [1], [0, 0, 0, 1, 1, 1], [0], [0]>} : vector<2x8x8xbf16>, vector<2x8x8xbf16>, vector<2x8x8xf32> -> vector<2x8x8xf32>
    %103 = arith.addf %102, %70 : vector<2x8x8xf32>
    %cst_40 = arith.constant dense<0xFF800000> : vector<2x8xf32>
    %104 = vector.multi_reduction <maximumf>, %103, %cst_40 [2] : vector<2x8x8xf32> to vector<2x8xf32>
    %105 = vector.shape_cast %104 : vector<2x8xf32> to vector<2x8x1xf32>
    %106 = vector.broadcast %105 : vector<2x8x1xf32> to vector<2x8x8xf32>
    %107 = arith.subf %103, %106 : vector<2x8x8xf32>
    %108 = math.exp %107 : vector<2x8x8xf32>
    %cst_41 = arith.constant dense<0.000000e+00> : vector<2x8xf32>
    %109 = vector.multi_reduction <add>, %108, %cst_41 [2] : vector<2x8x8xf32> to vector<2x8xf32>
    %110 = vector.shape_cast %109 : vector<2x8xf32> to vector<2x8x1xf32>
    %111 = tpu.reciprocal %110 {approx = true} : vector<2x8x1xf32> -> vector<2x8x1xf32>
    %112 = vector.broadcast %111 : vector<2x8x1xf32> to vector<2x8x8xf32>
    %113 = arith.mulf %108, %112 : vector<2x8x8xf32>
    %114 = arith.truncf %113 : vector<2x8x8xf32> to vector<2x8x8xbf16>
    %cst_42 = arith.constant dense<0.000000e+00> : vector<2x8x8xf32>
    %115 = tpu.matmul %114, %101, %cst_42 {dimension_numbers = #tpu.dot_dimension_numbers<[2], [1], [1], [2], [0, 0, 0, 1, 1, 2], [0], [0]>} : vector<2x8x8xbf16>, vector<2x8x8xbf16>, vector<2x8x8xf32> -> vector<2x8x8xf32>
    %116 = vector.shape_cast %115 : vector<2x8x8xf32> to vector<16x8xf32>
    %117 = arith.truncf %116 : vector<16x8xf32> to vector<16x8xbf16>
    %118 = vector.extract_strided_slice %76 {offsets = [0, 0], sizes = [8, 32], strides = [1, 1]} : vector<32x32xbf16> to vector<8x32xbf16>
    %cst_43 = arith.constant dense<0.000000e+00> : vector<16x32xf32>
    %119 = tpu.matmul %117, %118, %cst_43 {dimension_numbers = #tpu.dot_dimension_numbers<[1], [0], [0], [1], [0, 0, 1, 1], [], []>} : vector<16x8xbf16>, vector<8x32xbf16>, vector<16x32xf32> -> vector<16x32xf32>
    %120 = vector.extract_strided_slice %95 {offsets = [0, 0, 8], sizes = [2, 8, 8], strides = [1, 1, 1]} : vector<2x8x96xf32> to vector<2x8x8xf32>
    %121 = arith.truncf %120 : vector<2x8x8xf32> to vector<2x8x8xbf16>
    %122 = vector.extract_strided_slice %95 {offsets = [0, 0, 40], sizes = [2, 8, 8], strides = [1, 1, 1]} : vector<2x8x96xf32> to vector<2x8x8xf32>
    %123 = arith.truncf %122 : vector<2x8x8xf32> to vector<2x8x8xbf16>
    %124 = vector.extract_strided_slice %95 {offsets = [0, 0, 72], sizes = [2, 8, 8], strides = [1, 1, 1]} : vector<2x8x96xf32> to vector<2x8x8xf32>
    %125 = arith.truncf %124 : vector<2x8x8xf32> to vector<2x8x8xbf16>
    %cst_44 = arith.constant dense<0.000000e+00> : vector<2x8x8xf32>
    %126 = tpu.matmul %121, %123, %cst_44 {dimension_numbers = #tpu.dot_dimension_numbers<[2], [2], [1], [1], [0, 0, 0, 1, 1, 1], [0], [0]>} : vector<2x8x8xbf16>, vector<2x8x8xbf16>, vector<2x8x8xf32> -> vector<2x8x8xf32>
    %127 = arith.addf %126, %70 : vector<2x8x8xf32>
    %cst_45 = arith.constant dense<0xFF800000> : vector<2x8xf32>
    %128 = vector.multi_reduction <maximumf>, %127, %cst_45 [2] : vector<2x8x8xf32> to vector<2x8xf32>
    %129 = vector.shape_cast %128 : vector<2x8xf32> to vector<2x8x1xf32>
    %130 = vector.broadcast %129 : vector<2x8x1xf32> to vector<2x8x8xf32>
    %131 = arith.subf %127, %130 : vector<2x8x8xf32>
    %132 = math.exp %131 : vector<2x8x8xf32>
    %cst_46 = arith.constant dense<0.000000e+00> : vector<2x8xf32>
    %133 = vector.multi_reduction <add>, %132, %cst_46 [2] : vector<2x8x8xf32> to vector<2x8xf32>
    %134 = vector.shape_cast %133 : vector<2x8xf32> to vector<2x8x1xf32>
    %135 = tpu.reciprocal %134 {approx = true} : vector<2x8x1xf32> -> vector<2x8x1xf32>
    %136 = vector.broadcast %135 : vector<2x8x1xf32> to vector<2x8x8xf32>
    %137 = arith.mulf %132, %136 : vector<2x8x8xf32>
    %138 = arith.truncf %137 : vector<2x8x8xf32> to vector<2x8x8xbf16>
    %cst_47 = arith.constant dense<0.000000e+00> : vector<2x8x8xf32>
    %139 = tpu.matmul %138, %125, %cst_47 {dimension_numbers = #tpu.dot_dimension_numbers<[2], [1], [1], [2], [0, 0, 0, 1, 1, 2], [0], [0]>} : vector<2x8x8xbf16>, vector<2x8x8xbf16>, vector<2x8x8xf32> -> vector<2x8x8xf32>
    %140 = vector.shape_cast %139 : vector<2x8x8xf32> to vector<16x8xf32>
    %141 = arith.truncf %140 : vector<16x8xf32> to vector<16x8xbf16>
    %142 = vector.extract_strided_slice %76 {offsets = [8, 0], sizes = [8, 32], strides = [1, 1]} : vector<32x32xbf16> to vector<8x32xbf16>
    %cst_48 = arith.constant dense<0.000000e+00> : vector<16x32xf32>
    %143 = tpu.matmul %141, %142, %cst_48 {dimension_numbers = #tpu.dot_dimension_numbers<[1], [0], [0], [1], [0, 0, 1, 1], [], []>} : vector<16x8xbf16>, vector<8x32xbf16>, vector<16x32xf32> -> vector<16x32xf32>
    %144 = arith.addf %119, %143 : vector<16x32xf32>
    %145 = vector.extract_strided_slice %95 {offsets = [0, 0, 16], sizes = [2, 8, 8], strides = [1, 1, 1]} : vector<2x8x96xf32> to vector<2x8x8xf32>
    %146 = arith.truncf %145 : vector<2x8x8xf32> to vector<2x8x8xbf16>
    %147 = vector.extract_strided_slice %95 {offsets = [0, 0, 48], sizes = [2, 8, 8], strides = [1, 1, 1]} : vector<2x8x96xf32> to vector<2x8x8xf32>
    %148 = arith.truncf %147 : vector<2x8x8xf32> to vector<2x8x8xbf16>
    %149 = vector.extract_strided_slice %95 {offsets = [0, 0, 80], sizes = [2, 8, 8], strides = [1, 1, 1]} : vector<2x8x96xf32> to vector<2x8x8xf32>
    %150 = arith.truncf %149 : vector<2x8x8xf32> to vector<2x8x8xbf16>
    %cst_49 = arith.constant dense<0.000000e+00> : vector<2x8x8xf32>
    %151 = tpu.matmul %146, %148, %cst_49 {dimension_numbers = #tpu.dot_dimension_numbers<[2], [2], [1], [1], [0, 0, 0, 1, 1, 1], [0], [0]>} : vector<2x8x8xbf16>, vector<2x8x8xbf16>, vector<2x8x8xf32> -> vector<2x8x8xf32>
    %152 = arith.addf %151, %70 : vector<2x8x8xf32>
    %cst_50 = arith.constant dense<0xFF800000> : vector<2x8xf32>
    %153 = vector.multi_reduction <maximumf>, %152, %cst_50 [2] : vector<2x8x8xf32> to vector<2x8xf32>
    %154 = vector.shape_cast %153 : vector<2x8xf32> to vector<2x8x1xf32>
    %155 = vector.broadcast %154 : vector<2x8x1xf32> to vector<2x8x8xf32>
    %156 = arith.subf %152, %155 : vector<2x8x8xf32>
    %157 = math.exp %156 : vector<2x8x8xf32>
    %cst_51 = arith.constant dense<0.000000e+00> : vector<2x8xf32>
    %158 = vector.multi_reduction <add>, %157, %cst_51 [2] : vector<2x8x8xf32> to vector<2x8xf32>
    %159 = vector.shape_cast %158 : vector<2x8xf32> to vector<2x8x1xf32>
    %160 = tpu.reciprocal %159 {approx = true} : vector<2x8x1xf32> -> vector<2x8x1xf32>
    %161 = vector.broadcast %160 : vector<2x8x1xf32> to vector<2x8x8xf32>
    %162 = arith.mulf %157, %161 : vector<2x8x8xf32>
    %163 = arith.truncf %162 : vector<2x8x8xf32> to vector<2x8x8xbf16>
    %cst_52 = arith.constant dense<0.000000e+00> : vector<2x8x8xf32>
    %164 = tpu.matmul %163, %150, %cst_52 {dimension_numbers = #tpu.dot_dimension_numbers<[2], [1], [1], [2], [0, 0, 0, 1, 1, 2], [0], [0]>} : vector<2x8x8xbf16>, vector<2x8x8xbf16>, vector<2x8x8xf32> -> vector<2x8x8xf32>
    %165 = vector.shape_cast %164 : vector<2x8x8xf32> to vector<16x8xf32>
    %166 = arith.truncf %165 : vector<16x8xf32> to vector<16x8xbf16>
    %167 = vector.extract_strided_slice %76 {offsets = [16, 0], sizes = [8, 32], strides = [1, 1]} : vector<32x32xbf16> to vector<8x32xbf16>
    %cst_53 = arith.constant dense<0.000000e+00> : vector<16x32xf32>
    %168 = tpu.matmul %166, %167, %cst_53 {dimension_numbers = #tpu.dot_dimension_numbers<[1], [0], [0], [1], [0, 0, 1, 1], [], []>} : vector<16x8xbf16>, vector<8x32xbf16>, vector<16x32xf32> -> vector<16x32xf32>
    %169 = arith.addf %144, %168 : vector<16x32xf32>
    %170 = vector.extract_strided_slice %95 {offsets = [0, 0, 24], sizes = [2, 8, 8], strides = [1, 1, 1]} : vector<2x8x96xf32> to vector<2x8x8xf32>
    %171 = arith.truncf %170 : vector<2x8x8xf32> to vector<2x8x8xbf16>
    %172 = vector.extract_strided_slice %95 {offsets = [0, 0, 56], sizes = [2, 8, 8], strides = [1, 1, 1]} : vector<2x8x96xf32> to vector<2x8x8xf32>
    %173 = arith.truncf %172 : vector<2x8x8xf32> to vector<2x8x8xbf16>
    %174 = vector.extract_strided_slice %95 {offsets = [0, 0, 88], sizes = [2, 8, 8], strides = [1, 1, 1]} : vector<2x8x96xf32> to vector<2x8x8xf32>
    %175 = arith.truncf %174 : vector<2x8x8xf32> to vector<2x8x8xbf16>
    %cst_54 = arith.constant dense<0.000000e+00> : vector<2x8x8xf32>
    %176 = tpu.matmul %171, %173, %cst_54 {dimension_numbers = #tpu.dot_dimension_numbers<[2], [2], [1], [1], [0, 0, 0, 1, 1, 1], [0], [0]>} : vector<2x8x8xbf16>, vector<2x8x8xbf16>, vector<2x8x8xf32> -> vector<2x8x8xf32>
    %177 = arith.addf %176, %70 : vector<2x8x8xf32>
    %cst_55 = arith.constant dense<0xFF800000> : vector<2x8xf32>
    %178 = vector.multi_reduction <maximumf>, %177, %cst_55 [2] : vector<2x8x8xf32> to vector<2x8xf32>
    %179 = vector.shape_cast %178 : vector<2x8xf32> to vector<2x8x1xf32>
    %180 = vector.broadcast %179 : vector<2x8x1xf32> to vector<2x8x8xf32>
    %181 = arith.subf %177, %180 : vector<2x8x8xf32>
    %182 = math.exp %181 : vector<2x8x8xf32>
    %cst_56 = arith.constant dense<0.000000e+00> : vector<2x8xf32>
    %183 = vector.multi_reduction <add>, %182, %cst_56 [2] : vector<2x8x8xf32> to vector<2x8xf32>
    %184 = vector.shape_cast %183 : vector<2x8xf32> to vector<2x8x1xf32>
    %185 = tpu.reciprocal %184 {approx = true} : vector<2x8x1xf32> -> vector<2x8x1xf32>
    %186 = vector.broadcast %185 : vector<2x8x1xf32> to vector<2x8x8xf32>
    %187 = arith.mulf %182, %186 : vector<2x8x8xf32>
    %188 = arith.truncf %187 : vector<2x8x8xf32> to vector<2x8x8xbf16>
    %cst_57 = arith.constant dense<0.000000e+00> : vector<2x8x8xf32>
    %189 = tpu.matmul %188, %175, %cst_57 {dimension_numbers = #tpu.dot_dimension_numbers<[2], [1], [1], [2], [0, 0, 0, 1, 1, 2], [0], [0]>} : vector<2x8x8xbf16>, vector<2x8x8xbf16>, vector<2x8x8xf32> -> vector<2x8x8xf32>
    %190 = vector.shape_cast %189 : vector<2x8x8xf32> to vector<16x8xf32>
    %191 = arith.truncf %190 : vector<16x8xf32> to vector<16x8xbf16>
    %192 = vector.extract_strided_slice %76 {offsets = [24, 0], sizes = [8, 32], strides = [1, 1]} : vector<32x32xbf16> to vector<8x32xbf16>
    %cst_58 = arith.constant dense<0.000000e+00> : vector<16x32xf32>
    %193 = tpu.matmul %191, %192, %cst_58 {dimension_numbers = #tpu.dot_dimension_numbers<[1], [0], [0], [1], [0, 0, 1, 1], [], []>} : vector<16x8xbf16>, vector<8x32xbf16>, vector<16x32xf32> -> vector<16x32xf32>
    %194 = arith.addf %169, %193 : vector<16x32xf32>
    %195 = vector.broadcast %85 : vector<1x32xf32> to vector<16x32xf32>
    %196 = arith.addf %194, %195 : vector<16x32xf32>
    %197 = arith.addf %196, %62 : vector<16x32xf32>
    %cst_59 = arith.constant dense<0.000000e+00> : vector<16xf32>
    %198 = vector.multi_reduction <add>, %197, %cst_59 [1] : vector<16x32xf32> to vector<16xf32>
    %199 = vector.shape_cast %198 : vector<16xf32> to vector<16x1xf32>
    %cst_60 = arith.constant 3.200000e+01 : f32
    %200 = vector.broadcast %cst_60 : f32 to vector<16x1xf32>
    %201 = arith.divf %199, %200 : vector<16x1xf32>
    %202 = vector.broadcast %201 : vector<16x1xf32> to vector<16x32xf32>
    %203 = arith.subf %197, %202 : vector<16x32xf32>
    %204 = arith.mulf %203, %203 : vector<16x32xf32>
    %cst_61 = arith.constant dense<0.000000e+00> : vector<16xf32>
    %205 = vector.multi_reduction <add>, %204, %cst_61 [1] : vector<16x32xf32> to vector<16xf32>
    %206 = vector.shape_cast %205 : vector<16xf32> to vector<16x1xf32>
    %cst_62 = arith.constant 3.200000e+01 : f32
    %207 = vector.broadcast %cst_62 : f32 to vector<16x1xf32>
    %208 = arith.divf %206, %207 : vector<16x1xf32>
    %cst_63 = arith.constant 9.99999996E-13 : f32
    %209 = vector.broadcast %cst_63 : f32 to vector<16x1xf32>
    %210 = arith.addf %208, %209 : vector<16x1xf32>
    %211 = math.rsqrt %210 : vector<16x1xf32>
    %212 = vector.broadcast %211 : vector<16x1xf32> to vector<16x32xf32>
    %213 = arith.mulf %203, %212 : vector<16x32xf32>
    %214 = vector.broadcast %86 : vector<1x32xf32> to vector<16x32xf32>
    %215 = arith.mulf %213, %214 : vector<16x32xf32>
    %216 = vector.broadcast %87 : vector<1x32xf32> to vector<16x32xf32>
    %217 = arith.addf %215, %216 : vector<16x32xf32>
    %218 = arith.truncf %217 : vector<16x32xf32> to vector<16x32xbf16>
    %cst_64 = arith.constant dense<0.000000e+00> : vector<16x64xf32>
    %219 = tpu.matmul %218, %78, %cst_64 {dimension_numbers = #tpu.dot_dimension_numbers<[1], [0], [0], [1], [0, 0, 1, 1], [], []>} : vector<16x32xbf16>, vector<32x64xbf16>, vector<16x64xf32> -> vector<16x64xf32>
    %220 = vector.broadcast %82 : vector<1x64xf32> to vector<16x64xf32>
    %221 = arith.addf %219, %220 : vector<16x64xf32>
    %cst_65 = arith.constant 5.000000e-01 : f32
    %222 = vector.broadcast %cst_65 : f32 to vector<16x64xf32>
    %223 = arith.mulf %222, %221 : vector<16x64xf32>
    %cst_66 = arith.constant 0.707106769 : f32
    %224 = vector.broadcast %cst_66 : f32 to vector<16x64xf32>
    %225 = arith.mulf %221, %224 : vector<16x64xf32>
    %226 = math.erf %225 : vector<16x64xf32>
    %cst_67 = arith.constant 1.000000e+00 : f32
    %227 = vector.broadcast %cst_67 : f32 to vector<16x64xf32>
    %228 = arith.addf %227, %226 : vector<16x64xf32>
    %229 = arith.mulf %223, %228 : vector<16x64xf32>
    %230 = arith.truncf %229 : vector<16x64xf32> to vector<16x64xbf16>
    %cst_68 = arith.constant dense<0.000000e+00> : vector<16x32xf32>
    %231 = tpu.matmul %230, %80, %cst_68 {dimension_numbers = #tpu.dot_dimension_numbers<[1], [0], [0], [1], [0, 0, 1, 1], [], []>} : vector<16x64xbf16>, vector<64x32xbf16>, vector<16x32xf32> -> vector<16x32xf32>
    %232 = vector.broadcast %88 : vector<1x32xf32> to vector<16x32xf32>
    %233 = arith.addf %231, %232 : vector<16x32xf32>
    %234 = arith.addf %233, %217 : vector<16x32xf32>
    %cst_69 = arith.constant dense<0.000000e+00> : vector<16xf32>
    %235 = vector.multi_reduction <add>, %234, %cst_69 [1] : vector<16x32xf32> to vector<16xf32>
    %236 = vector.shape_cast %235 : vector<16xf32> to vector<16x1xf32>
    %cst_70 = arith.constant 3.200000e+01 : f32
    %237 = vector.broadcast %cst_70 : f32 to vector<16x1xf32>
    %238 = arith.divf %236, %237 : vector<16x1xf32>
    %239 = vector.broadcast %238 : vector<16x1xf32> to vector<16x32xf32>
    %240 = arith.subf %234, %239 : vector<16x32xf32>
    %241 = arith.mulf %240, %240 : vector<16x32xf32>
    %cst_71 = arith.constant dense<0.000000e+00> : vector<16xf32>
    %242 = vector.multi_reduction <add>, %241, %cst_71 [1] : vector<16x32xf32> to vector<16xf32>
    %243 = vector.shape_cast %242 : vector<16xf32> to vector<16x1xf32>
    %cst_72 = arith.constant 3.200000e+01 : f32
    %244 = vector.broadcast %cst_72 : f32 to vector<16x1xf32>
    %245 = arith.divf %243, %244 : vector<16x1xf32>
    %cst_73 = arith.constant 9.99999996E-13 : f32
    %246 = vector.broadcast %cst_73 : f32 to vector<16x1xf32>
    %247 = arith.addf %245, %246 : vector<16x1xf32>
    %248 = math.rsqrt %247 : vector<16x1xf32>
    %249 = vector.broadcast %248 : vector<16x1xf32> to vector<16x32xf32>
    %250 = arith.mulf %240, %249 : vector<16x32xf32>
    %251 = vector.broadcast %89 : vector<1x32xf32> to vector<16x32xf32>
    %252 = arith.mulf %250, %251 : vector<16x32xf32>
    %253 = vector.broadcast %90 : vector<1x32xf32> to vector<16x32xf32>
    %254 = arith.addf %252, %253 : vector<16x32xf32>
    %255 = math.roundeven %254 : vector<16x32xf32>
    %cst_74 = arith.constant -1.280000e+02 : f32
    %cst_75 = arith.constant 1.270000e+02 : f32
    %256 = vector.broadcast %cst_74 : f32 to vector<16x32xf32>
    %257 = arith.maximumf %256, %255 : vector<16x32xf32>
    %258 = vector.broadcast %cst_75 : f32 to vector<16x32xf32>
    %259 = arith.minimumf %258, %257 : vector<16x32xf32>
    %c1 = arith.constant 1 : index
    %c0_76 = arith.constant 0 : index
    %c0_77 = arith.constant 0 : index
    %260 = vector.load %arg5[%c1, %c0_76, %c0_77] : memref<2x32x96xbf16, #tpu.memory_space<vmem>>, vector<1x32x96xbf16>
    %261 = vector.shape_cast %260 : vector<1x32x96xbf16> to vector<32x96xbf16>
    %c1_78 = arith.constant 1 : index
    %c0_79 = arith.constant 0 : index
    %c0_80 = arith.constant 0 : index
    %262 = vector.load %arg6[%c1_78, %c0_79, %c0_80] : memref<2x1x96xf32, #tpu.memory_space<vmem>>, vector<1x1x96xf32>
    %263 = vector.shape_cast %262 : vector<1x1x96xf32> to vector<1x96xf32>
    %c1_81 = arith.constant 1 : index
    %c0_82 = arith.constant 0 : index
    %c0_83 = arith.constant 0 : index
    %264 = vector.load %arg7[%c1_81, %c0_82, %c0_83] : memref<2x32x32xbf16, #tpu.memory_space<vmem>>, vector<1x32x32xbf16>
    %265 = vector.shape_cast %264 : vector<1x32x32xbf16> to vector<32x32xbf16>
    %c1_84 = arith.constant 1 : index
    %c0_85 = arith.constant 0 : index
    %c0_86 = arith.constant 0 : index
    %266 = vector.load %arg8[%c1_84, %c0_85, %c0_86] : memref<2x32x64xbf16, #tpu.memory_space<vmem>>, vector<1x32x64xbf16>
    %267 = vector.shape_cast %266 : vector<1x32x64xbf16> to vector<32x64xbf16>
    %c1_87 = arith.constant 1 : index
    %c0_88 = arith.constant 0 : index
    %c0_89 = arith.constant 0 : index
    %268 = vector.load %arg9[%c1_87, %c0_88, %c0_89] : memref<2x64x32xbf16, #tpu.memory_space<vmem>>, vector<1x64x32xbf16>
    %269 = vector.shape_cast %268 : vector<1x64x32xbf16> to vector<64x32xbf16>
    %c1_90 = arith.constant 1 : index
    %c0_91 = arith.constant 0 : index
    %c0_92 = arith.constant 0 : index
    %270 = vector.load %arg10[%c1_90, %c0_91, %c0_92] : memref<2x1x64xf32, #tpu.memory_space<vmem>>, vector<1x1x64xf32>
    %271 = vector.shape_cast %270 : vector<1x1x64xf32> to vector<1x64xf32>
    %c1_93 = arith.constant 1 : index
    %c0_94 = arith.constant 0 : index
    %c0_95 = arith.constant 0 : index
    %272 = vector.load %arg11[%c1_93, %c0_94, %c0_95] : memref<2x6x32xf32, #tpu.memory_space<vmem>>, vector<1x6x32xf32>
    %273 = vector.shape_cast %272 : vector<1x6x32xf32> to vector<6x32xf32>
    %274 = vector.extract_strided_slice %273 {offsets = [0, 0], sizes = [1, 32], strides = [1, 1]} : vector<6x32xf32> to vector<1x32xf32>
    %275 = vector.extract_strided_slice %273 {offsets = [1, 0], sizes = [1, 32], strides = [1, 1]} : vector<6x32xf32> to vector<1x32xf32>
    %276 = vector.extract_strided_slice %273 {offsets = [2, 0], sizes = [1, 32], strides = [1, 1]} : vector<6x32xf32> to vector<1x32xf32>
    %277 = vector.extract_strided_slice %273 {offsets = [3, 0], sizes = [1, 32], strides = [1, 1]} : vector<6x32xf32> to vector<1x32xf32>
    %278 = vector.extract_strided_slice %273 {offsets = [4, 0], sizes = [1, 32], strides = [1, 1]} : vector<6x32xf32> to vector<1x32xf32>
    %279 = vector.extract_strided_slice %273 {offsets = [5, 0], sizes = [1, 32], strides = [1, 1]} : vector<6x32xf32> to vector<1x32xf32>
    %280 = arith.truncf %259 : vector<16x32xf32> to vector<16x32xbf16>
    %cst_96 = arith.constant dense<0.000000e+00> : vector<16x96xf32>
    %281 = tpu.matmul %280, %261, %cst_96 {dimension_numbers = #tpu.dot_dimension_numbers<[1], [0], [0], [1], [0, 0, 1, 1], [], []>} : vector<16x32xbf16>, vector<32x96xbf16>, vector<16x96xf32> -> vector<16x96xf32>
    %282 = vector.broadcast %263 : vector<1x96xf32> to vector<16x96xf32>
    %283 = arith.addf %281, %282 : vector<16x96xf32>
    %284 = vector.shape_cast %283 : vector<16x96xf32> to vector<2x8x96xf32>
    %285 = vector.extract_strided_slice %284 {offsets = [0, 0, 0], sizes = [2, 8, 8], strides = [1, 1, 1]} : vector<2x8x96xf32> to vector<2x8x8xf32>
    %286 = arith.truncf %285 : vector<2x8x8xf32> to vector<2x8x8xbf16>
    %287 = vector.extract_strided_slice %284 {offsets = [0, 0, 32], sizes = [2, 8, 8], strides = [1, 1, 1]} : vector<2x8x96xf32> to vector<2x8x8xf32>
    %288 = arith.truncf %287 : vector<2x8x8xf32> to vector<2x8x8xbf16>
    %289 = vector.extract_strided_slice %284 {offsets = [0, 0, 64], sizes = [2, 8, 8], strides = [1, 1, 1]} : vector<2x8x96xf32> to vector<2x8x8xf32>
    %290 = arith.truncf %289 : vector<2x8x8xf32> to vector<2x8x8xbf16>
    %cst_97 = arith.constant dense<0.000000e+00> : vector<2x8x8xf32>
    %291 = tpu.matmul %286, %288, %cst_97 {dimension_numbers = #tpu.dot_dimension_numbers<[2], [2], [1], [1], [0, 0, 0, 1, 1, 1], [0], [0]>} : vector<2x8x8xbf16>, vector<2x8x8xbf16>, vector<2x8x8xf32> -> vector<2x8x8xf32>
    %292 = arith.addf %291, %70 : vector<2x8x8xf32>
    %cst_98 = arith.constant dense<0xFF800000> : vector<2x8xf32>
    %293 = vector.multi_reduction <maximumf>, %292, %cst_98 [2] : vector<2x8x8xf32> to vector<2x8xf32>
    %294 = vector.shape_cast %293 : vector<2x8xf32> to vector<2x8x1xf32>
    %295 = vector.broadcast %294 : vector<2x8x1xf32> to vector<2x8x8xf32>
    %296 = arith.subf %292, %295 : vector<2x8x8xf32>
    %297 = math.exp %296 : vector<2x8x8xf32>
    %cst_99 = arith.constant dense<0.000000e+00> : vector<2x8xf32>
    %298 = vector.multi_reduction <add>, %297, %cst_99 [2] : vector<2x8x8xf32> to vector<2x8xf32>
    %299 = vector.shape_cast %298 : vector<2x8xf32> to vector<2x8x1xf32>
    %300 = tpu.reciprocal %299 {approx = true} : vector<2x8x1xf32> -> vector<2x8x1xf32>
    %301 = vector.broadcast %300 : vector<2x8x1xf32> to vector<2x8x8xf32>
    %302 = arith.mulf %297, %301 : vector<2x8x8xf32>
    %303 = arith.truncf %302 : vector<2x8x8xf32> to vector<2x8x8xbf16>
    %cst_100 = arith.constant dense<0.000000e+00> : vector<2x8x8xf32>
    %304 = tpu.matmul %303, %290, %cst_100 {dimension_numbers = #tpu.dot_dimension_numbers<[2], [1], [1], [2], [0, 0, 0, 1, 1, 2], [0], [0]>} : vector<2x8x8xbf16>, vector<2x8x8xbf16>, vector<2x8x8xf32> -> vector<2x8x8xf32>
    %305 = vector.shape_cast %304 : vector<2x8x8xf32> to vector<16x8xf32>
    %306 = arith.truncf %305 : vector<16x8xf32> to vector<16x8xbf16>
    %307 = vector.extract_strided_slice %265 {offsets = [0, 0], sizes = [8, 32], strides = [1, 1]} : vector<32x32xbf16> to vector<8x32xbf16>
    %cst_101 = arith.constant dense<0.000000e+00> : vector<16x32xf32>
    %308 = tpu.matmul %306, %307, %cst_101 {dimension_numbers = #tpu.dot_dimension_numbers<[1], [0], [0], [1], [0, 0, 1, 1], [], []>} : vector<16x8xbf16>, vector<8x32xbf16>, vector<16x32xf32> -> vector<16x32xf32>
    %309 = vector.extract_strided_slice %284 {offsets = [0, 0, 8], sizes = [2, 8, 8], strides = [1, 1, 1]} : vector<2x8x96xf32> to vector<2x8x8xf32>
    %310 = arith.truncf %309 : vector<2x8x8xf32> to vector<2x8x8xbf16>
    %311 = vector.extract_strided_slice %284 {offsets = [0, 0, 40], sizes = [2, 8, 8], strides = [1, 1, 1]} : vector<2x8x96xf32> to vector<2x8x8xf32>
    %312 = arith.truncf %311 : vector<2x8x8xf32> to vector<2x8x8xbf16>
    %313 = vector.extract_strided_slice %284 {offsets = [0, 0, 72], sizes = [2, 8, 8], strides = [1, 1, 1]} : vector<2x8x96xf32> to vector<2x8x8xf32>
    %314 = arith.truncf %313 : vector<2x8x8xf32> to vector<2x8x8xbf16>
    %cst_102 = arith.constant dense<0.000000e+00> : vector<2x8x8xf32>
    %315 = tpu.matmul %310, %312, %cst_102 {dimension_numbers = #tpu.dot_dimension_numbers<[2], [2], [1], [1], [0, 0, 0, 1, 1, 1], [0], [0]>} : vector<2x8x8xbf16>, vector<2x8x8xbf16>, vector<2x8x8xf32> -> vector<2x8x8xf32>
    %316 = arith.addf %315, %70 : vector<2x8x8xf32>
    %cst_103 = arith.constant dense<0xFF800000> : vector<2x8xf32>
    %317 = vector.multi_reduction <maximumf>, %316, %cst_103 [2] : vector<2x8x8xf32> to vector<2x8xf32>
    %318 = vector.shape_cast %317 : vector<2x8xf32> to vector<2x8x1xf32>
    %319 = vector.broadcast %318 : vector<2x8x1xf32> to vector<2x8x8xf32>
    %320 = arith.subf %316, %319 : vector<2x8x8xf32>
    %321 = math.exp %320 : vector<2x8x8xf32>
    %cst_104 = arith.constant dense<0.000000e+00> : vector<2x8xf32>
    %322 = vector.multi_reduction <add>, %321, %cst_104 [2] : vector<2x8x8xf32> to vector<2x8xf32>
    %323 = vector.shape_cast %322 : vector<2x8xf32> to vector<2x8x1xf32>
    %324 = tpu.reciprocal %323 {approx = true} : vector<2x8x1xf32> -> vector<2x8x1xf32>
    %325 = vector.broadcast %324 : vector<2x8x1xf32> to vector<2x8x8xf32>
    %326 = arith.mulf %321, %325 : vector<2x8x8xf32>
    %327 = arith.truncf %326 : vector<2x8x8xf32> to vector<2x8x8xbf16>
    %cst_105 = arith.constant dense<0.000000e+00> : vector<2x8x8xf32>
    %328 = tpu.matmul %327, %314, %cst_105 {dimension_numbers = #tpu.dot_dimension_numbers<[2], [1], [1], [2], [0, 0, 0, 1, 1, 2], [0], [0]>} : vector<2x8x8xbf16>, vector<2x8x8xbf16>, vector<2x8x8xf32> -> vector<2x8x8xf32>
    %329 = vector.shape_cast %328 : vector<2x8x8xf32> to vector<16x8xf32>
    %330 = arith.truncf %329 : vector<16x8xf32> to vector<16x8xbf16>
    %331 = vector.extract_strided_slice %265 {offsets = [8, 0], sizes = [8, 32], strides = [1, 1]} : vector<32x32xbf16> to vector<8x32xbf16>
    %cst_106 = arith.constant dense<0.000000e+00> : vector<16x32xf32>
    %332 = tpu.matmul %330, %331, %cst_106 {dimension_numbers = #tpu.dot_dimension_numbers<[1], [0], [0], [1], [0, 0, 1, 1], [], []>} : vector<16x8xbf16>, vector<8x32xbf16>, vector<16x32xf32> -> vector<16x32xf32>
    %333 = arith.addf %308, %332 : vector<16x32xf32>
    %334 = vector.extract_strided_slice %284 {offsets = [0, 0, 16], sizes = [2, 8, 8], strides = [1, 1, 1]} : vector<2x8x96xf32> to vector<2x8x8xf32>
    %335 = arith.truncf %334 : vector<2x8x8xf32> to vector<2x8x8xbf16>
    %336 = vector.extract_strided_slice %284 {offsets = [0, 0, 48], sizes = [2, 8, 8], strides = [1, 1, 1]} : vector<2x8x96xf32> to vector<2x8x8xf32>
    %337 = arith.truncf %336 : vector<2x8x8xf32> to vector<2x8x8xbf16>
    %338 = vector.extract_strided_slice %284 {offsets = [0, 0, 80], sizes = [2, 8, 8], strides = [1, 1, 1]} : vector<2x8x96xf32> to vector<2x8x8xf32>
    %339 = arith.truncf %338 : vector<2x8x8xf32> to vector<2x8x8xbf16>
    %cst_107 = arith.constant dense<0.000000e+00> : vector<2x8x8xf32>
    %340 = tpu.matmul %335, %337, %cst_107 {dimension_numbers = #tpu.dot_dimension_numbers<[2], [2], [1], [1], [0, 0, 0, 1, 1, 1], [0], [0]>} : vector<2x8x8xbf16>, vector<2x8x8xbf16>, vector<2x8x8xf32> -> vector<2x8x8xf32>
    %341 = arith.addf %340, %70 : vector<2x8x8xf32>
    %cst_108 = arith.constant dense<0xFF800000> : vector<2x8xf32>
    %342 = vector.multi_reduction <maximumf>, %341, %cst_108 [2] : vector<2x8x8xf32> to vector<2x8xf32>
    %343 = vector.shape_cast %342 : vector<2x8xf32> to vector<2x8x1xf32>
    %344 = vector.broadcast %343 : vector<2x8x1xf32> to vector<2x8x8xf32>
    %345 = arith.subf %341, %344 : vector<2x8x8xf32>
    %346 = math.exp %345 : vector<2x8x8xf32>
    %cst_109 = arith.constant dense<0.000000e+00> : vector<2x8xf32>
    %347 = vector.multi_reduction <add>, %346, %cst_109 [2] : vector<2x8x8xf32> to vector<2x8xf32>
    %348 = vector.shape_cast %347 : vector<2x8xf32> to vector<2x8x1xf32>
    %349 = tpu.reciprocal %348 {approx = true} : vector<2x8x1xf32> -> vector<2x8x1xf32>
    %350 = vector.broadcast %349 : vector<2x8x1xf32> to vector<2x8x8xf32>
    %351 = arith.mulf %346, %350 : vector<2x8x8xf32>
    %352 = arith.truncf %351 : vector<2x8x8xf32> to vector<2x8x8xbf16>
    %cst_110 = arith.constant dense<0.000000e+00> : vector<2x8x8xf32>
    %353 = tpu.matmul %352, %339, %cst_110 {dimension_numbers = #tpu.dot_dimension_numbers<[2], [1], [1], [2], [0, 0, 0, 1, 1, 2], [0], [0]>} : vector<2x8x8xbf16>, vector<2x8x8xbf16>, vector<2x8x8xf32> -> vector<2x8x8xf32>
    %354 = vector.shape_cast %353 : vector<2x8x8xf32> to vector<16x8xf32>
    %355 = arith.truncf %354 : vector<16x8xf32> to vector<16x8xbf16>
    %356 = vector.extract_strided_slice %265 {offsets = [16, 0], sizes = [8, 32], strides = [1, 1]} : vector<32x32xbf16> to vector<8x32xbf16>
    %cst_111 = arith.constant dense<0.000000e+00> : vector<16x32xf32>
    %357 = tpu.matmul %355, %356, %cst_111 {dimension_numbers = #tpu.dot_dimension_numbers<[1], [0], [0], [1], [0, 0, 1, 1], [], []>} : vector<16x8xbf16>, vector<8x32xbf16>, vector<16x32xf32> -> vector<16x32xf32>
    %358 = arith.addf %333, %357 : vector<16x32xf32>
    %359 = vector.extract_strided_slice %284 {offsets = [0, 0, 24], sizes = [2, 8, 8], strides = [1, 1, 1]} : vector<2x8x96xf32> to vector<2x8x8xf32>
    %360 = arith.truncf %359 : vector<2x8x8xf32> to vector<2x8x8xbf16>
    %361 = vector.extract_strided_slice %284 {offsets = [0, 0, 56], sizes = [2, 8, 8], strides = [1, 1, 1]} : vector<2x8x96xf32> to vector<2x8x8xf32>
    %362 = arith.truncf %361 : vector<2x8x8xf32> to vector<2x8x8xbf16>
    %363 = vector.extract_strided_slice %284 {offsets = [0, 0, 88], sizes = [2, 8, 8], strides = [1, 1, 1]} : vector<2x8x96xf32> to vector<2x8x8xf32>
    %364 = arith.truncf %363 : vector<2x8x8xf32> to vector<2x8x8xbf16>
    %cst_112 = arith.constant dense<0.000000e+00> : vector<2x8x8xf32>
    %365 = tpu.matmul %360, %362, %cst_112 {dimension_numbers = #tpu.dot_dimension_numbers<[2], [2], [1], [1], [0, 0, 0, 1, 1, 1], [0], [0]>} : vector<2x8x8xbf16>, vector<2x8x8xbf16>, vector<2x8x8xf32> -> vector<2x8x8xf32>
    %366 = arith.addf %365, %70 : vector<2x8x8xf32>
    %cst_113 = arith.constant dense<0xFF800000> : vector<2x8xf32>
    %367 = vector.multi_reduction <maximumf>, %366, %cst_113 [2] : vector<2x8x8xf32> to vector<2x8xf32>
    %368 = vector.shape_cast %367 : vector<2x8xf32> to vector<2x8x1xf32>
    %369 = vector.broadcast %368 : vector<2x8x1xf32> to vector<2x8x8xf32>
    %370 = arith.subf %366, %369 : vector<2x8x8xf32>
    %371 = math.exp %370 : vector<2x8x8xf32>
    %cst_114 = arith.constant dense<0.000000e+00> : vector<2x8xf32>
    %372 = vector.multi_reduction <add>, %371, %cst_114 [2] : vector<2x8x8xf32> to vector<2x8xf32>
    %373 = vector.shape_cast %372 : vector<2x8xf32> to vector<2x8x1xf32>
    %374 = tpu.reciprocal %373 {approx = true} : vector<2x8x1xf32> -> vector<2x8x1xf32>
    %375 = vector.broadcast %374 : vector<2x8x1xf32> to vector<2x8x8xf32>
    %376 = arith.mulf %371, %375 : vector<2x8x8xf32>
    %377 = arith.truncf %376 : vector<2x8x8xf32> to vector<2x8x8xbf16>
    %cst_115 = arith.constant dense<0.000000e+00> : vector<2x8x8xf32>
    %378 = tpu.matmul %377, %364, %cst_115 {dimension_numbers = #tpu.dot_dimension_numbers<[2], [1], [1], [2], [0, 0, 0, 1, 1, 2], [0], [0]>} : vector<2x8x8xbf16>, vector<2x8x8xbf16>, vector<2x8x8xf32> -> vector<2x8x8xf32>
    %379 = vector.shape_cast %378 : vector<2x8x8xf32> to vector<16x8xf32>
    %380 = arith.truncf %379 : vector<16x8xf32> to vector<16x8xbf16>
    %381 = vector.extract_strided_slice %265 {offsets = [24, 0], sizes = [8, 32], strides = [1, 1]} : vector<32x32xbf16> to vector<8x32xbf16>
    %cst_116 = arith.constant dense<0.000000e+00> : vector<16x32xf32>
    %382 = tpu.matmul %380, %381, %cst_116 {dimension_numbers = #tpu.dot_dimension_numbers<[1], [0], [0], [1], [0, 0, 1, 1], [], []>} : vector<16x8xbf16>, vector<8x32xbf16>, vector<16x32xf32> -> vector<16x32xf32>
    %383 = arith.addf %358, %382 : vector<16x32xf32>
    %384 = vector.broadcast %274 : vector<1x32xf32> to vector<16x32xf32>
    %385 = arith.addf %383, %384 : vector<16x32xf32>
    %386 = arith.addf %385, %259 : vector<16x32xf32>
    %cst_117 = arith.constant dense<0.000000e+00> : vector<16xf32>
    %387 = vector.multi_reduction <add>, %386, %cst_117 [1] : vector<16x32xf32> to vector<16xf32>
    %388 = vector.shape_cast %387 : vector<16xf32> to vector<16x1xf32>
    %cst_118 = arith.constant 3.200000e+01 : f32
    %389 = vector.broadcast %cst_118 : f32 to vector<16x1xf32>
    %390 = arith.divf %388, %389 : vector<16x1xf32>
    %391 = vector.broadcast %390 : vector<16x1xf32> to vector<16x32xf32>
    %392 = arith.subf %386, %391 : vector<16x32xf32>
    %393 = arith.mulf %392, %392 : vector<16x32xf32>
    %cst_119 = arith.constant dense<0.000000e+00> : vector<16xf32>
    %394 = vector.multi_reduction <add>, %393, %cst_119 [1] : vector<16x32xf32> to vector<16xf32>
    %395 = vector.shape_cast %394 : vector<16xf32> to vector<16x1xf32>
    %cst_120 = arith.constant 3.200000e+01 : f32
    %396 = vector.broadcast %cst_120 : f32 to vector<16x1xf32>
    %397 = arith.divf %395, %396 : vector<16x1xf32>
    %cst_121 = arith.constant 9.99999996E-13 : f32
    %398 = vector.broadcast %cst_121 : f32 to vector<16x1xf32>
    %399 = arith.addf %397, %398 : vector<16x1xf32>
    %400 = math.rsqrt %399 : vector<16x1xf32>
    %401 = vector.broadcast %400 : vector<16x1xf32> to vector<16x32xf32>
    %402 = arith.mulf %392, %401 : vector<16x32xf32>
    %403 = vector.broadcast %275 : vector<1x32xf32> to vector<16x32xf32>
    %404 = arith.mulf %402, %403 : vector<16x32xf32>
    %405 = vector.broadcast %276 : vector<1x32xf32> to vector<16x32xf32>
    %406 = arith.addf %404, %405 : vector<16x32xf32>
    %407 = arith.truncf %406 : vector<16x32xf32> to vector<16x32xbf16>
    %cst_122 = arith.constant dense<0.000000e+00> : vector<16x64xf32>
    %408 = tpu.matmul %407, %267, %cst_122 {dimension_numbers = #tpu.dot_dimension_numbers<[1], [0], [0], [1], [0, 0, 1, 1], [], []>} : vector<16x32xbf16>, vector<32x64xbf16>, vector<16x64xf32> -> vector<16x64xf32>
    %409 = vector.broadcast %271 : vector<1x64xf32> to vector<16x64xf32>
    %410 = arith.addf %408, %409 : vector<16x64xf32>
    %cst_123 = arith.constant 5.000000e-01 : f32
    %411 = vector.broadcast %cst_123 : f32 to vector<16x64xf32>
    %412 = arith.mulf %411, %410 : vector<16x64xf32>
    %cst_124 = arith.constant 0.707106769 : f32
    %413 = vector.broadcast %cst_124 : f32 to vector<16x64xf32>
    %414 = arith.mulf %410, %413 : vector<16x64xf32>
    %415 = math.erf %414 : vector<16x64xf32>
    %cst_125 = arith.constant 1.000000e+00 : f32
    %416 = vector.broadcast %cst_125 : f32 to vector<16x64xf32>
    %417 = arith.addf %416, %415 : vector<16x64xf32>
    %418 = arith.mulf %412, %417 : vector<16x64xf32>
    %419 = arith.truncf %418 : vector<16x64xf32> to vector<16x64xbf16>
    %cst_126 = arith.constant dense<0.000000e+00> : vector<16x32xf32>
    %420 = tpu.matmul %419, %269, %cst_126 {dimension_numbers = #tpu.dot_dimension_numbers<[1], [0], [0], [1], [0, 0, 1, 1], [], []>} : vector<16x64xbf16>, vector<64x32xbf16>, vector<16x32xf32> -> vector<16x32xf32>
    %421 = vector.broadcast %277 : vector<1x32xf32> to vector<16x32xf32>
    %422 = arith.addf %420, %421 : vector<16x32xf32>
    %423 = arith.addf %422, %406 : vector<16x32xf32>
    %cst_127 = arith.constant dense<0.000000e+00> : vector<16xf32>
    %424 = vector.multi_reduction <add>, %423, %cst_127 [1] : vector<16x32xf32> to vector<16xf32>
    %425 = vector.shape_cast %424 : vector<16xf32> to vector<16x1xf32>
    %cst_128 = arith.constant 3.200000e+01 : f32
    %426 = vector.broadcast %cst_128 : f32 to vector<16x1xf32>
    %427 = arith.divf %425, %426 : vector<16x1xf32>
    %428 = vector.broadcast %427 : vector<16x1xf32> to vector<16x32xf32>
    %429 = arith.subf %423, %428 : vector<16x32xf32>
    %430 = arith.mulf %429, %429 : vector<16x32xf32>
    %cst_129 = arith.constant dense<0.000000e+00> : vector<16xf32>
    %431 = vector.multi_reduction <add>, %430, %cst_129 [1] : vector<16x32xf32> to vector<16xf32>
    %432 = vector.shape_cast %431 : vector<16xf32> to vector<16x1xf32>
    %cst_130 = arith.constant 3.200000e+01 : f32
    %433 = vector.broadcast %cst_130 : f32 to vector<16x1xf32>
    %434 = arith.divf %432, %433 : vector<16x1xf32>
    %cst_131 = arith.constant 9.99999996E-13 : f32
    %435 = vector.broadcast %cst_131 : f32 to vector<16x1xf32>
    %436 = arith.addf %434, %435 : vector<16x1xf32>
    %437 = math.rsqrt %436 : vector<16x1xf32>
    %438 = vector.broadcast %437 : vector<16x1xf32> to vector<16x32xf32>
    %439 = arith.mulf %429, %438 : vector<16x32xf32>
    %440 = vector.broadcast %278 : vector<1x32xf32> to vector<16x32xf32>
    %441 = arith.mulf %439, %440 : vector<16x32xf32>
    %442 = vector.broadcast %279 : vector<1x32xf32> to vector<16x32xf32>
    %443 = arith.addf %441, %442 : vector<16x32xf32>
    %c0_132 = arith.constant 0 : index
    %c0_133 = arith.constant 0 : index
    %444 = vector.load %arg12[%c0_132, %c0_133] : memref<16x32xf32, #tpu.memory_space<vmem>>, vector<16x32xf32>
    tpu.vector_store %arg12[%c0_132, %c0_133], %443 {strides = array<i32>} : memref<16x32xf32, #tpu.memory_space<vmem>>, vector<16x32xf32>,
    return
  }
}

</mosaic_0001>

<bundles_post_ra>
// kernel: dist_midibert_quant_forward.1
= control target key start
LH: loop header
LB: loop body
LE: loop exit
PB: predicated region body
PF: predicated region fallthrough
CT: control target
= control target key end

     0   :  { %v3781_v2 = vmov 0   ;;  %v3782_v3 = vmov 1   ;;  %v3783_v7 = vmov 0.0   ;;  %v3784_v12 = vmov 2   ;;  %s4538_s0 = inlined_call_operand.vmem [shape: s32[16,4], index: 0, kind: input, shape index: {}]   ;;  %s4539_s1 = inlined_call_operand.vmem [shape: f32[2,8], index: 1, kind: input, shape index: {}]   ;;  %s4540_s2 = inlined_call_operand.vmem [shape: bf16[64,32], index: 2, kind: input, shape index: {}]   ;;  %s4541_s3 = inlined_call_operand.vmem [shape: f32[16,32], index: 3, kind: input, shape index: {}]   ;;  %s4542_s4 = inlined_call_operand.vmem [shape: f32[2,32], index: 4, kind: input, shape index: {}]   ;;  %s4543_s5 = inlined_call_operand.vmem [shape: bf16[2,32,96], index: 5, kind: input, shape index: {}]   ;;  %s4544_s6 = inlined_call_operand.vmem [shape: f32[2,1,96], index: 6, kind: input, shape index: {}]   ;;  %s4545_s7 = inlined_call_operand.vmem [shape: bf16[2,32,32], index: 7, kind: input, shape index: {}]   ;;  %s4546_s8 = inlined_call_operand.vmem [shape: bf16[2,32,64], index: 8, kind: input, shape index: {}]   ;;  %s4547_s9 = inlined_call_operand.vmem [shape: bf16[2,64,32], index: 9, kind: input, shape index: {}]   ;;  %s4548_s10 = inlined_call_operand.vmem [shape: f32[2,1,64], index: 10, kind: input, shape index: {}]   ;;  %s4549_s11 = inlined_call_operand.vmem [shape: f32[2,6,32], index: 11, kind: input, shape index: {}]   ;;  %s4550_s12 = inlined_call_operand.hbm [shape: f32[16,32], index: 12, kind: output, shape index: {}]  }
   0x1   :  { %v43_v0 = vld [vmem:[%s4538_s0] sm:$0xff]  ;;  %v44_v1 = vld [vmem:[%s4538_s0 + $0x8] sm:$0xff]  ;;  %3641 = vset.pattern.permute.xlu0 %v3781_v2  ;;  %3642 = vset.pattern.permute.xlu1 %v3782_v3  ;;  %v3647_v6 = vld [vmem:[%s4540_s2 + $0x18] sm:$0xff]   ;;  %v3785_v16 = vmov 3  }
   0x2   :  { %v61_v4 = vadd.s32 16, %v43_v0  ;;  %48 = vperm.xlu0 %3641, %v43_v0   ;;  %v62_v5 = vadd.s32 16, %v44_v1  ;;  %3296 = vmatprep.subr.bf16.mxu0 %v3783_v7  ;;  %v77_v8 = vadd.s32 32, %v43_v0  ;;  %v78_v9 = vadd.s32 32, %v44_v1  ;;  %v3648_v11 = vld [vmem:[%s4540_s2 + $0x10] sm:$0xff]   ;;  %v3649_v14 = vld [vmem:[%s4540_s2 + $0x8] sm:$0xff]  }
   0x3   :  { %3297 = vmatpush3.bf16.msra.mxu0 %v3647_v6  ;;  %3308 = vmatprep.subr.bf16.mxu1 %v3783_v7  ;;  %v94_v10 = vadd.s32 48, %v44_v1  ;;  %v93_v13 = vadd.s32 48, %v43_v0  ;;  %v3650_v15 = vld [vmem:[%s4540_s2] sm:$0xff]  }
   0x4   :  { %64 = vperm.xlu1 %3642, %v61_v4   ;;  %3298 = vmatprep.subr.bf16.mxu0 %v3783_v7 }
   0x6   :  { %51 = vperm.xlu0 %3641, %v44_v1  }
   0x7   :  { %3299 = vmatpush3.bf16.msra.mxu0 %v3648_v11 }
   0x8   :  { %67 = vperm.xlu1 %3642, %v62_v5   ;;  %3300 = vmatprep.subr.bf16.mxu0 %v3783_v7 }
   0xa   :  { %3643 = vset.pattern.permute.xlu0 %v3784_v12 }
   0xb   :  { %80 = vperm.xlu0 %3643, %v77_v8   ;;  %3301 = vmatpush3.bf16.msra.mxu0 %v3649_v14 }
   0xc   :  { %3644 = vset.pattern.permute.xlu1 %v3784_v12  ;;  %3302 = vmatprep.subr.bf16.mxu0 %v3783_v7 }
   0xd   :  { %83 = vperm.xlu1 %3644, %v78_v9  }
   0xf   :  { %3646 = vset.pattern.permute.xlu0 %v3785_v16  ;;  %3303 = vmatpush3.bf16.msra.mxu0 %v3650_v15 }
  0x10   :  { %99 = vperm.xlu0 %3646, %v94_v10  }
  0x11   :  { %3645 = vset.pattern.permute.xlu1 %v3785_v16 }
  0x12   :  { %96 = vperm.xlu1 %3645, %v93_v13  }
  0x13   :  { %17 = vsyncpa [#allocation3], 0  ;;  %vm3786_vm0 = vmmov 0   ;;  %3334 = vmatprep.subr.bf16.mxu0 %v3783_v7  ;;  %v45_v17 = vlaneseq  ;;  %vm145_vm9 = vcmask 523264   ;;  %v119_v42 = vld [vmem:[%s4541_s3] sm:$0xff]  ;;  %vm190_vm10 = vcmask 261120  }
  0x14   :  { %3304 = vmatprep.mubr.msk.bf16.mxu0 %vm3786_vm0, %v3783_v7  ;;  %3312 = vmatprep.mubr.msk.bf16.mxu1 %vm3786_vm0, %v3783_v7  ;;  %v120_v46 = vld [vmem:[%s4541_s3 + $0x8] sm:$0xff]  ;;  %v3652_v63 = vld [vmem:[%s4543_s5] sm:$0xff]   ;;  %s3787_s23 = smov 96   ;;  %vm357_vm11 = vcmask 64512   ;;  %vm482_vm12 = vcmask 1043456   ;;  %s3790_s26 = smov 88  }
  0x15   :  { %v46_v20 = vand.u32 127, %v45_v17  ;;  %v3651_v62 = vld [vmem:[%s4543_s5 + $0x8] sm:$0xff]   ;;  %v3926_v6 = vshrl.u32 %v45_v17, 7  ;;  %v118_v9 = vld [vmem:[%s4542_s4] sm:$0x3]  ;;  %s3791_s0 = smov 120  }
  0x16   :  { %3309 = vmatpush3.bf16.msra.mxu1 %v3651_v62  ;;  %s3792_s27 = smov 56   ;;  %s3793_s28 = smov 80  }
  0x17   :  { %3310 = vmatprep.subr.bf16.mxu1 %v3783_v7  ;;  %v3929_v8 = vsub.s32 0, %v3926_v6  ;;  %v3936_v13 = vsub.s32 1, %v3926_v6  ;;  %s3794_s29 = smov 112   ;;  %s3795_s15 = smov 48  }
  0x18   :  { %s3796_s16 = smov 72   ;;  %s3797_s3 = smov 104  }
  0x19   :  { %v221_v12 = vrot.slane %v118_v9, %v3929_v8  ;;  %v227_v17 = vrot.slane %v118_v9, %v3936_v13  ;;  %s3798_s19 = smov 40  }
  0x1a   :  { %3311 = vmatpush3.bf16.msra.mxu1 %v3652_v63 }
  0x1b   :  { %3316 = vmatprep.subr.bf16.mxu1 %v3783_v7 }
  0x7d   :  { %v49_v18 = vpop.permute.xlu0 %48 }
  0x7e   :  { %vm53_vm3 = vcmp.eq.s32.totalorder %v46_v20, %v49_v18 }
  0x7f   :  { %v65_v19 = vpop.permute.xlu1 %64  ;;  %v3087_v27 = vsel %vm53_vm3, 1.0, %v3783_v7 }
  0x80   :  { %vm69_vm4 = vcmp.eq.s32.totalorder %v46_v20, %v65_v19 }
  0x81   :  { %v52_v21 = vpop.permute.xlu0 %51  ;;  %v3089_v28 = vsel %vm69_vm4, 1.0, %v3783_v7 }
  0x82   :  { %vm54_vm1 = vcmp.eq.s32.totalorder %v46_v20, %v52_v21  ;;  %v75_v32 = vadd.f32 %v3089_v28, %v3087_v27 }
  0x83   :  { %v68_v22 = vpop.permute.xlu1 %67  ;;  %v3088_v24 = vsel %vm54_vm1, 1.0, %v3783_v7 }
  0x84   :  { %vm70_vm2 = vcmp.eq.s32.totalorder %v46_v20, %v68_v22  ;;  %v3100_v22 = vld [vmem:[%s4544_s6] ss:$0 sm:$0xff] }
  0x85   :  { %v3090_v25 = vsel %vm70_vm2, 1.0, %v3783_v7 }
  0x86   :  { %v81_v23 = vpop.permute.xlu0 %80  ;;  %v76_v30 = vadd.f32 %v3090_v25, %v3088_v24 }
  0x87   :  { %vm85_vm5 = vcmp.eq.s32.totalorder %v46_v20, %v81_v23 }
  0x88   :  { %v84_v26 = vpop.permute.xlu1 %83  ;;  %v3091_v31 = vsel %vm85_vm5, 1.0, %v3783_v7 }
  0x89   :  { %vm86_vm6 = vcmp.eq.s32.totalorder %v46_v20, %v84_v26  ;;  %v91_v36 = vadd.f32 %v3091_v31, %v75_v32 }
  0x8a   :  { %v3092_v29 = vsel %vm86_vm6, 1.0, %v3783_v7 }
  0x8b   :  { %v100_v33 = vpop.permute.xlu0 %99  ;;  %v92_v34 = vadd.f32 %v3092_v29, %v76_v30 }
  0x8c   :  { %vm102_vm7 = vcmp.eq.s32.totalorder %v46_v20, %v100_v33 }
  0x8d   :  { %v97_v35 = vpop.permute.xlu1 %96  ;;  %v3094_v37 = vsel %vm102_vm7, 1.0, %v3783_v7 }
  0x8e   :  { %vm101_vm8 = vcmp.eq.s32.totalorder %v46_v20, %v97_v35  ;;  %v108_v38 = vadd.f32 %v3094_v37, %v92_v34  ;;  %v3788_v35 = vmov 1966171168   ;;  %v230_v37 = vld [vmem:[%s4539_s1] sm:$0x3]  ;;  %s3789_s1 = smov 64  }
  0x8f   :  { %v3093_v39 = vsel %vm101_vm8, 1.0, %v3783_v7 }
  0x90   :  { %v107_v40 = vadd.f32 %v3093_v39, %v91_v36  ;;  %v235_v36 = vunpack.c.l.s4 %v3788_v35 }
  0x92   :  { %v109_v41 = vpack.c.bf16 %v108_v38, %v107_v40  ;;  %v231_v38 = vsub.f32 1.0, %v230_v37  ;;  %v236_v39 = vunpack.c.0.s8 %v235_v36 }
  0x94   :  { %3305 = vmatmul.mubr.msk.bf16.vlgmr.msra.gmra.mxu0 %vm145_vm9, %v109_v41  ;;  %v232_v40 = vmul.f32 -10000.0, %v231_v38  ;;  %v239_v41 = vsub.s32 %v236_v39, %v3926_v6 }
  0x95   :  { %3336 = vmatprep.mubr.msk.bf16.mxu0 %vm3786_vm0, %v3783_v7 }
 0x154   :  { %v183_v43 = vpop.f32.mrf.mxu0 }
 0x155   :  { %v184_v44 = vadd.f32 %v183_v43, %v119_v42  ;;  %v240_v42 = vrot.slane %v232_v40, %v239_v41 }
 0x156   :  { %v3306_v45 = vpop.f32.mrf.mxu0 }
 0x157   :  { %v191_v47 = vsel %vm190_vm10, %v184_v44, 0.0  ;;  %v248_v43 = vrot.slane %v240_v42, %v239_v41  ;;  %v241_v45 = vcombine.high %v240_v42, %v240_v42 }
 0x158   :  { %192 = vadd.xlane.f32.xlu1 %v191_v47  ;;  %v186_v48 = vpop.f32.mrf.mxu0 }
 0x159   :  { %v187_v49 = vadd.f32 %v186_v48, %v120_v46  ;;  %v255_v48 = vrot.slane %v241_v45, %v239_v41 }
 0x15a   :  { %v3307_v50 = vpop.f32.mrf.mxu0 }
 0x15b   :  { %v194_v51 = vsel %vm190_vm10, %v187_v49, 0.0 }
 0x15c   :  { %195 = vadd.xlane.f32.xlu0 %v194_v51 }
 0x1e1   :  { %v193_v52 = vpop.xlane.xlu1 %192 }
 0x1e2   :  { %v198_v53 = vmul.f32 0.03125, %v193_v52  ;;  %v3981_v52 = vrot.slane %v255_v48, %v3929_v8 }
 0x1e4   :  { %v200_v54 = vsub.f32 %v184_v44, %v198_v53  ;;  %v3976_v44 = vrot.slane %v248_v43, %v3929_v8 }
 0x1e5   :  { %v196_v55 = vpop.xlane.xlu0 %195 }
 0x1e6   :  { %v199_v56 = vmul.f32 0.03125, %v196_v55  ;;  %v202_v57 = vmul.f32 %v200_v54, %v200_v54 }
 0x1e8   :  { %v201_v58 = vsub.f32 %v187_v49, %v199_v56  ;;  %v204_v59 = vsel %vm190_vm10, %v202_v57, 0.0 }
 0x1e9   :  { %205 = vadd.xlane.f32.xlu1 %v204_v59 }
 0x1ea   :  { %v203_v60 = vmul.f32 %v201_v58, %v201_v58 }
 0x1ec   :  { %v207_v61 = vsel %vm190_vm10, %v203_v60, 0.0 }
 0x1ed   :  { %208 = vadd.xlane.f32.xlu0 %v207_v61 }
 0x272   :  { %v206_v0 = vpop.xlane.xlu1 %205 }
 0x273   :  { %v210_v1 = vmul.f32 0.03125, %v206_v0 }
 0x275   :  { %v212_v2 = vadd.f32 1e-12, %v210_v1 }
 0x276   :  { %v209_v3 = vpop.xlane.xlu0 %208 }
 0x277   :  { %3667 = vrsqrt.f32 %v212_v2  ;;  %v211_v4 = vmul.f32 0.03125, %v209_v3 }
 0x279   :  { %v213_v5 = vadd.f32 1e-12, %v211_v4 }
 0x27b   :  { %3669 = vrsqrt.f32 %v213_v5 }
 0x284   :  { %v3668_v10 = vpop.eup %3667 }
 0x285   :  { %v216_v11 = vmul.f32 %v3668_v10, %v200_v54 }
 0x287   :  { %v222_v16 = vmul.f32 %v221_v12, %v216_v11 }
 0x288   :  { %v3670_v14 = vpop.eup %3669 }
 0x289   :  { %v217_v15 = vmul.f32 %v3670_v14, %v201_v58  ;;  %v3939_v19 = vadd.f32 %v227_v17, %v222_v16 }
 0x28b   :  { %v223_v18 = vmul.f32 %v221_v12, %v217_v15 }
 0x28d   :  { %v3941_v20 = vadd.f32 %v227_v17, %v223_v18 }
 0x28f   :  { %v289_v21 = vpack.c.bf16 %v3941_v20, %v3939_v19 }
 0x291   :  { %3313 = vmatmul.mubr.msk.bf16.vlgmr.msra.gmra.mxu1 %vm190_vm10, %v289_v21 }
 0x292   :  { %3318 = vmatprep.mubr.msk.bf16.mxu1 %vm3786_vm0, %v3783_v7 }
 0x351   :  { %v345_v23 = vpop.f32.mrf.mxu1 }
 0x352   :  { %v346_v24 = vadd.f32 %v3100_v22, %v345_v23 }
 0x353   :  { %v3314_v25 = vpop.f32.mrf.mxu1 }
 0x354   :  { %v3951_v26 = vpack.c.bf16 %v346_v24, %v346_v24 }
 0x355   :  { %v348_v27 = vpop.f32.mrf.mxu1 }
 0x356   :  { %v349_v28 = vadd.f32 %v3100_v22, %v348_v27  ;;  %355 = vrot.lane.b32.xlu1 %v3951_v26, %s3787_s23 }
 0x357   :  { %v3315_v29 = vpop.f32.mrf.mxu1 }
 0x358   :  { %v3955_v30 = vpack.c.bf16 %v349_v28, %v349_v28 }
 0x35a   :  { %405 = vrot.lane.b32.xlu0 %v3955_v30, %s3787_s23 }
 0x3c8   :  { %v356_v31 = vpop.permute.xlu1 %355 }
 0x3c9   :  { %v362_v32 = vsel %vm357_vm11, %v356_v31, 0 }
 0x3ca   :  { %3317 = vmatpush3.bf16.xpose.msra.mxu1 %v362_v32 }
 0x3cb   :  { %3322 = vmatprep.subr.bf16.mxu1 %v3783_v7 }
 0x3cc   :  { %v406_v33 = vpop.permute.xlu0 %405 }
 0x3cd   :  { %v411_v34 = vsel %vm357_vm11, %v406_v33, 0 }
 0x3d1   :  { %3319 = vmatmul.mubr.msk.bf16.vlgmr.msra.gmra.mxu1 %vm357_vm11, %v3951_v26 }
 0x3d2   :  { %3323 = vmatpush3.bf16.xpose.msra.mxu1 %v411_v34  ;;  %3324 = vmatprep.mubr.msk.bf16.mxu1 %vm3786_vm0, %v3783_v7 }
 0x3d3   :  { %3328 = vmatprep.subr.bf16.mxu1 %v3783_v7 }
 0x3d9   :  { %3325 = vmatmul.mubr.msk.bf16.vlgmr.msra.gmra.mxu1 %vm357_vm11, %v3955_v30 }
 0x3da   :  { %3330 = vmatprep.mubr.msk.bf16.mxu1 %vm3786_vm0, %v3783_v7 }
 0x491   :  { %v398_v46 = vpop.f32.mrf.mxu1 }
 0x492   :  { %v399_v47 = vadd.f32 %v398_v46, %v3976_v44 }
 0x493   :  { %v3320_v49 = vpop.f32.mrf.mxu1 }
 0x494   :  { %v453_v50 = vsel %vm357_vm11, %v399_v47, -inf }
 0x495   :  { %454 = vmax.xlane.f32.xlu1 %v453_v50  ;;  %v401_v51 = vpop.f32.mrf.mxu1 }
 0x497   :  { %v3321_v53 = vpop.f32.mrf.mxu1 }
 0x499   :  { %v447_v54 = vpop.f32.mrf.mxu1 }
 0x49a   :  { %v448_v55 = vadd.f32 %v447_v54, %v3981_v52 }
 0x49b   :  { %v3326_v56 = vpop.f32.mrf.mxu1 }
 0x49c   :  { %v456_v57 = vsel %vm357_vm11, %v448_v55, -inf }
 0x49d   :  { %457 = vmax.xlane.f32.xlu0 %v456_v57  ;;  %v450_v58 = vpop.f32.mrf.mxu1 }
 0x49f   :  { %v3327_v59 = vpop.f32.mrf.mxu1 }
 0x4a6   :  { %477 = vrot.lane.b32.xlu1 %v3951_v26, %s3789_s1 }
 0x51e   :  { %v455_v60 = vpop.xlane.xlu1 %454 }
 0x51f   :  { %v459_v61 = vsub.f32 %v399_v47, %v455_v60 }
 0x521   :  { %v461_v62 = vmul.f32 1.442695, %v459_v61 }
 0x522   :  { %v478_v63 = vpop.permute.xlu1 %477 }
 0x523   :  { %3671 = vpow2.f32 %v461_v62  ;;  %v484_v0 = vsel %vm482_vm12, %v478_v63, 0 }
 0x524   :  { %3329 = vmatpush3.bf16.msra.mxu1 %v484_v0 }
 0x525   :  { %3340 = vmatprep.subr.bf16.mxu1 %v3783_v7 }
 0x526   :  { %v458_v1 = vpop.xlane.xlu0 %457 }
 0x527   :  { %v460_v2 = vsub.f32 %v448_v55, %v458_v1 }
 0x529   :  { %v463_v3 = vmul.f32 1.442695, %v460_v2 }
 0x52b   :  { %3673 = vpow2.f32 %v463_v3 }
 0x530   :  { %v3672_v4 = vpop.eup %3671 }
 0x531   :  { %v465_v5 = vsel %vm357_vm11, %v3672_v4, 0.0 }
 0x532   :  { %466 = vadd.xlane.f32.xlu1 %v465_v5 }
 0x538   :  { %v3674_v9 = vpop.eup %3673 }
 0x539   :  { %v468_v10 = vsel %vm357_vm11, %v3674_v9, 0.0 }
 0x53a   :  { %469 = vadd.xlane.f32.xlu0 %v468_v10 }
 0x543   :  { %577 = vrot.lane.b32.xlu1 %v3951_v26, %s3790_s26 }
 0x547   :  { %627 = vrot.lane.b32.xlu1 %v3955_v30, %s3790_s26 }
 0x54b   :  { %625 = vrot.lane.b32.xlu1 %v3955_v30, %s3791_s0 }
 0x550   :  { %526 = vrot.lane.b32.xlu0 %v3955_v30, %s3789_s1 }
 0x554   :  { %575 = vrot.lane.b32.xlu0 %v3951_v26, %s3791_s0 }
 0x5bb   :  { %v467_v11 = vpop.xlane.xlu1 %466 }
 0x5bc   :  { %3675 = vrcp.f32 %v467_v11 }
 0x5bf   :  { %v578_v18 = vpop.permute.xlu1 %577 }
 0x5c0   :  { %v583_v22 = vsel %vm357_vm11, %v578_v18, 0 }
 0x5c3   :  { %v470_v12 = vpop.xlane.xlu0 %469  ;;  %v628_v25 = vpop.permute.xlu1 %627 }
 0x5c4   :  { %3677 = vrcp.f32 %v470_v12  ;;  %v633_v29 = vsel %vm357_vm11, %v628_v25, 0  ;;  %v272_v25 = vld [vmem:[%s4545_s7 + $0x4] sm:$0xf] }
 0x5c7   :  { %v527_v14 = vpop.permute.xlu0 %526  ;;  %v626_v31 = vpop.permute.xlu1 %625 }
 0x5c8   :  { %v532_v15 = vsel %vm482_vm12, %v527_v14, 0 }
 0x5c9   :  { %v3676_v16 = vpop.eup %3675  ;;  %3335 = vmatpush3.bf16.msra.mxu0 %v532_v15  ;;  %v271_v15 = vld [vmem:[%s4545_s7] sm:$0xf] }
 0x5ca   :  { %v473_v17 = vmul.f32 %v3676_v16, %v3672_v4  ;;  %3346 = vmatprep.subr.bf16.mxu0 %v3783_v7  ;;  %v847_v18 = vsel %vm482_vm12, %v271_v15, 0 }
 0x5cb   :  { %v576_v28 = vpop.permute.xlu0 %575 }
 0x5cc   :  { %v475_v21 = vpack.c.bf16 %v473_v17, %v473_v17 }
 0x5ce   :  { %3331 = vmatmul.mubr.msk.bf16.vlgmr.msra.gmra.mxu1 %vm357_vm11, %v475_v21 }
 0x5cf   :  { %3341 = vmatpush3.bf16.xpose.msra.mxu1 %v583_v22  ;;  %3342 = vmatprep.mubr.msk.bf16.mxu1 %vm3786_vm0, %v3783_v7 }
 0x5d0   :  { %3352 = vmatprep.subr.bf16.mxu1 %v3783_v7 }
 0x5d1   :  { %v3678_v23 = vpop.eup %3677 }
 0x5d2   :  { %v474_v24 = vmul.f32 %v3678_v23, %v3674_v9 }
 0x5d4   :  { %v476_v27 = vpack.c.bf16 %v474_v24, %v474_v24 }
 0x5d6   :  { %3337 = vmatmul.mubr.msk.bf16.vlgmr.msra.gmra.mxu0 %vm357_vm11, %v476_v27  ;;  %3343 = vmatmul.mubr.msk.bf16.vlgmr.msra.gmra.mxu1 %vm357_vm11, %v576_v28  ;;  %v800_v27 = vsel %vm482_vm12, %v272_v25, 0 }
 0x5d7   :  { %3347 = vmatpush3.bf16.xpose.msra.mxu0 %v633_v29  ;;  %3348 = vmatprep.mubr.msk.bf16.mxu0 %vm3786_vm0, %v3783_v7 }
 0x5d8   :  { %3358 = vmatprep.subr.bf16.mxu0 %v3783_v7  ;;  %3354 = vmatprep.mubr.msk.bf16.mxu1 %vm3786_vm0, %v3783_v7 }
 0x5de   :  { %3349 = vmatmul.mubr.msk.bf16.vlgmr.msra.gmra.mxu0 %vm357_vm11, %v626_v31 }
 0x5df   :  { %3360 = vmatprep.mubr.msk.bf16.mxu0 %vm3786_vm0, %v3783_v7 }
 0x68e   :  { %v4019_v32 = vpop.f32.mrf.mxu1 }
 0x690   :  { %v3332_v33 = vpop.f32.mrf.mxu1 }
 0x692   :  { %v523_v34 = vpop.f32.mrf.mxu1 }
 0x694   :  { %v3333_v35 = vpop.f32.mrf.mxu1 }
 0x696   :  { %v4021_v36 = vpop.f32.mrf.mxu0  ;;  %v619_v37 = vpop.f32.mrf.mxu1 }
 0x697   :  { %v574_v38 = vpack.c.bf16 %v4021_v36, %v4019_v32  ;;  %v620_v39 = vadd.f32 %v619_v37, %v3976_v44 }
 0x698   :  { %v3338_v40 = vpop.f32.mrf.mxu0  ;;  %v3344_v41 = vpop.f32.mrf.mxu1 }
 0x699   :  { %v675_v42 = vsel %vm357_vm11, %v620_v39, -inf }
 0x69a   :  { %676 = vmax.xlane.f32.xlu0 %v675_v42  ;;  %v571_v43 = vpop.f32.mrf.mxu0  ;;  %v622_v45 = vpop.f32.mrf.mxu1 }
 0x69c   :  { %v3339_v46 = vpop.f32.mrf.mxu0  ;;  %v3345_v47 = vpop.f32.mrf.mxu1 }
 0x69e   :  { %v669_v48 = vpop.f32.mrf.mxu0 }
 0x69f   :  { %v670_v49 = vadd.f32 %v669_v48, %v3981_v52 }
 0x6a0   :  { %v3350_v50 = vpop.f32.mrf.mxu0 }
 0x6a1   :  { %v678_v51 = vsel %vm357_vm11, %v670_v49, -inf }
 0x6a2   :  { %679 = vmax.xlane.f32.xlu1 %v678_v51  ;;  %v672_v53 = vpop.f32.mrf.mxu0 }
 0x6a4   :  { %v3351_v54 = vpop.f32.mrf.mxu0 }
 0x6b3   :  { %699 = vrot.lane.b32.xlu1 %v3951_v26, %s3792_s27 }
 0x6b7   :  { %892 = vrot.lane.b32.xlu1 %v3951_v26, %s3793_s28 }
 0x6bb   :  { %942 = vrot.lane.b32.xlu1 %v3955_v30, %s3793_s28 }
 0x6bf   :  { %940 = vrot.lane.b32.xlu1 %v3955_v30, %s3794_s29 }
 0x723   :  { %v677_v55 = vpop.xlane.xlu0 %676 }
 0x724   :  { %v681_v56 = vsub.f32 %v620_v39, %v677_v55 }
 0x726   :  { %v683_v57 = vmul.f32 1.442695, %v681_v56 }
 0x728   :  { %3679 = vpow2.f32 %v683_v57 }
 0x72b   :  { %v680_v58 = vpop.xlane.xlu1 %679 }
 0x72c   :  { %v682_v59 = vsub.f32 %v670_v49, %v680_v58 }
 0x72e   :  { %v685_v60 = vmul.f32 1.442695, %v682_v59 }
 0x72f   :  { %v700_v61 = vpop.permute.xlu1 %699 }
 0x730   :  { %3681 = vpow2.f32 %v685_v60  ;;  %v705_v62 = vsel %vm482_vm12, %v700_v61, 0 }
 0x731   :  { %3353 = vmatpush3.bf16.msra.mxu1 %v705_v62 }
 0x732   :  { %3364 = vmatprep.subr.bf16.mxu1 %v3783_v7 }
 0x733   :  { %v893_v21 = vpop.permute.xlu1 %892 }
 0x734   :  { %v898_v36 = vsel %vm357_vm11, %v893_v21, 0 }
 0x735   :  { %v3680_v63 = vpop.eup %3679 }
 0x736   :  { %v687_v0 = vsel %vm357_vm11, %v3680_v63, 0.0 }
 0x737   :  { %688 = vadd.xlane.f32.xlu0 %v687_v0  ;;  %v943_v22 = vpop.permute.xlu1 %942 }
 0x738   :  { %v948_v23 = vsel %vm357_vm11, %v943_v22, 0 }
 0x73b   :  { %v941_v24 = vpop.permute.xlu1 %940 }
 0x73d   :  { %v3682_v1 = vpop.eup %3681 }
 0x73e   :  { %v690_v2 = vsel %vm357_vm11, %v3682_v1, 0.0 }
 0x73f   :  { %691 = vadd.xlane.f32.xlu0 %v690_v2 }
 0x755   :  { %747 = vrot.lane.b32.xlu0 %v3955_v30, %s3792_s27 }
 0x759   :  { %890 = vrot.lane.b32.xlu0 %v3951_v26, %s3794_s29 }
 0x7c0   :  { %v689_v3 = vpop.xlane.xlu0 %688 }
 0x7c1   :  { %3683 = vrcp.f32 %v689_v3 }
 0x7c8   :  { %v692_v4 = vpop.xlane.xlu0 %691 }
 0x7c9   :  { %3685 = vrcp.f32 %v692_v4 }
 0x7cc   :  { %v748_v5 = vpop.permute.xlu0 %747 }
 0x7cd   :  { %v753_v9 = vsel %vm482_vm12, %v748_v5, 0 }
 0x7ce   :  { %v3684_v10 = vpop.eup %3683  ;;  %3359 = vmatpush3.bf16.msra.mxu0 %v753_v9 }
 0x7cf   :  { %v695_v11 = vmul.f32 %v3684_v10, %v3680_v63  ;;  %3370 = vmatprep.subr.bf16.mxu0 %v3783_v7 }
 0x7d0   :  { %v891_v40 = vpop.permute.xlu0 %890 }
 0x7d1   :  { %v697_v12 = vpack.c.bf16 %v695_v11, %v695_v11 }
 0x7d3   :  { %3355 = vmatmul.mubr.msk.bf16.vlgmr.msra.gmra.mxu1 %vm357_vm11, %v697_v12 }
 0x7d4   :  { %3366 = vmatprep.mubr.msk.bf16.mxu1 %vm3786_vm0, %v3783_v7  ;;  %3365 = vmatpush3.bf16.msra.mxu1 %v800_v27 }
 0x7d5   :  { %3376 = vmatprep.subr.bf16.mxu1 %v3783_v7 }
 0x7d6   :  { %v3686_v14 = vpop.eup %3685 }
 0x7d7   :  { %v696_v16 = vmul.f32 %v3686_v14, %v3682_v1 }
 0x7d9   :  { %v698_v17 = vpack.c.bf16 %v696_v16, %v696_v16 }
 0x7db   :  { %3361 = vmatmul.mubr.msk.bf16.vlgmr.msra.gmra.mxu0 %vm357_vm11, %v698_v17 }
 0x7dc   :  { %3371 = vmatpush3.bf16.msra.mxu0 %v847_v18  ;;  %3372 = vmatprep.mubr.msk.bf16.mxu0 %vm3786_vm0, %v3783_v7 }
 0x7dd   :  { %3382 = vmatprep.subr.bf16.mxu0 %v3783_v7 }
 0x7e3   :  { %3373 = vmatmul.mubr.msk.bf16.vlgmr.msra.gmra.mxu0 %vm357_vm11, %v574_v38 }
 0x7e4   :  { %3383 = vmatpush3.bf16.xpose.msra.mxu0 %v948_v23  ;;  %3384 = vmatprep.mubr.msk.bf16.mxu0 %vm3786_vm0, %v3783_v7 }
 0x7e5   :  { %3394 = vmatprep.subr.bf16.mxu0 %v3783_v7 }
 0x7eb   :  { %3385 = vmatmul.mubr.msk.bf16.vlgmr.msra.gmra.mxu0 %vm357_vm11, %v941_v24 }
 0x7ec   :  { %3396 = vmatprep.mubr.msk.bf16.mxu0 %vm3786_vm0, %v3783_v7 }
 0x893   :  { %v741_v28 = vpop.f32.mrf.mxu1 }
 0x895   :  { %v3356_v29 = vpop.f32.mrf.mxu1 }
 0x897   :  { %v744_v31 = vpop.f32.mrf.mxu1 }
 0x898   :  { %v273_v31 = vld [vmem:[%s4545_s7 + $0x8] sm:$0xf] }
 0x899   :  { %v3357_v32 = vpop.f32.mrf.mxu1 }
 0x89a   :  { %v1115_v32 = vsel %vm482_vm12, %v273_v31, 0 }
 0x89b   :  { %v789_v33 = vpop.f32.mrf.mxu0 }
 0x89c   :  { %v795_v34 = vpack.c.bf16 %v789_v33, %v741_v28 }
 0x89d   :  { %v3362_v35 = vpop.f32.mrf.mxu0 }
 0x89e   :  { %3367 = vmatmul.mubr.msk.bf16.vlgmr.msra.gmra.mxu1 %vm357_vm11, %v795_v34 }
 0x89f   :  { %3377 = vmatpush3.bf16.xpose.msra.mxu1 %v898_v36  ;;  %v792_v37 = vpop.f32.mrf.mxu0  ;;  %3378 = vmatprep.mubr.msk.bf16.mxu1 %vm3786_vm0, %v3783_v7 }
 0x8a0   :  { %3388 = vmatprep.subr.bf16.mxu1 %v3783_v7 }
 0x8a1   :  { %v3363_v38 = vpop.f32.mrf.mxu0 }
 0x8a3   :  { %v4079_v39 = vpop.f32.mrf.mxu0 }
 0x8a5   :  { %v3374_v41 = vpop.f32.mrf.mxu0 }
 0x8a6   :  { %3379 = vmatmul.mubr.msk.bf16.vlgmr.msra.gmra.mxu1 %vm357_vm11, %v891_v40 }
 0x8a7   :  { %v4082_v42 = vpop.f32.mrf.mxu0  ;;  %3390 = vmatprep.mubr.msk.bf16.mxu1 %vm3786_vm0, %v3783_v7 }
 0x8a9   :  { %v3375_v43 = vpop.f32.mrf.mxu0 }
 0x8ab   :  { %v984_v45 = vpop.f32.mrf.mxu0 }
 0x8ac   :  { %v985_v46 = vadd.f32 %v984_v45, %v3981_v52 }
 0x8ad   :  { %v3386_v47 = vpop.f32.mrf.mxu0 }
 0x8ae   :  { %v993_v48 = vsel %vm357_vm11, %v985_v46, -inf }
 0x8af   :  { %994 = vmax.xlane.f32.xlu1 %v993_v48  ;;  %v987_v49 = vpop.f32.mrf.mxu0 }
 0x8b1   :  { %v3387_v50 = vpop.f32.mrf.mxu0 }
 0x8c0   :  { %1014 = vrot.lane.b32.xlu1 %v3951_v26, %s3795_s15 }
 0x8c4   :  { %1162 = vrot.lane.b32.xlu1 %v3951_v26, %s3796_s16 }
 0x8c8   :  { %1212 = vrot.lane.b32.xlu1 %v3955_v30, %s3796_s16 }
 0x8cc   :  { %1210 = vrot.lane.b32.xlu1 %v3955_v30, %s3797_s3 }
 0x938   :  { %v995_v51 = vpop.xlane.xlu1 %994 }
 0x939   :  { %v997_v55 = vsub.f32 %v985_v46, %v995_v51 }
 0x93b   :  { %v1000_v56 = vmul.f32 1.442695, %v997_v55 }
 0x93c   :  { %v1015_v53 = vpop.permute.xlu1 %1014 }
 0x93d   :  { %v1020_v54 = vsel %vm482_vm12, %v1015_v53, 0  ;;  %3687 = vpow2.f32 %v1000_v56 }
 0x93e   :  { %3389 = vmatpush3.bf16.msra.mxu1 %v1020_v54 }
 0x93f   :  { %3400 = vmatprep.subr.bf16.mxu1 %v3783_v7 }
 0x940   :  { %v1163_v22 = vpop.permute.xlu1 %1162 }
 0x941   :  { %v1168_v24 = vsel %vm357_vm11, %v1163_v22, 0 }
 0x944   :  { %v1213_v38 = vpop.permute.xlu1 %1212 }
 0x945   :  { %v1218_v49 = vsel %vm357_vm11, %v1213_v38, 0 }
 0x948   :  { %v1211_v54 = vpop.permute.xlu1 %1210 }
 0x94a   :  { %v3688_v1 = vpop.eup %3687 }
 0x94b   :  { %v1005_v4 = vsel %vm357_vm11, %v3688_v1, 0.0 }
 0x95e   :  { %v4098_v57 = vpop.f32.mrf.mxu1 }
 0x960   :  { %v3368_v58 = vpop.f32.mrf.mxu1 }
 0x962   :  { %v4100_v59 = vpop.f32.mrf.mxu1 }
 0x964   :  { %v3369_v60 = vpop.f32.mrf.mxu1 }
 0x966   :  { %v934_v61 = vpop.f32.mrf.mxu1 }
 0x967   :  { %v935_v62 = vadd.f32 %v934_v61, %v3976_v44 }
 0x968   :  { %v3380_v63 = vpop.f32.mrf.mxu1 }
 0x969   :  { %v990_v0 = vsel %vm357_vm11, %v935_v62, -inf }
 0x96a   :  { %991 = vmax.xlane.f32.xlu0 %v990_v0  ;;  %v937_v2 = vpop.f32.mrf.mxu1 }
 0x96b   :  { %v887_v2 = vadd.f32 %v4082_v42, %v4100_v59 }
 0x96c   :  { %v3381_v3 = vpop.f32.mrf.mxu1 }
 0x96e   :  { %1006 = vadd.xlane.f32.xlu0 %v1005_v4 }
 0x9f3   :  { %v992_v5 = vpop.xlane.xlu0 %991 }
 0x9f4   :  { %v996_v9 = vsub.f32 %v935_v62, %v992_v5  ;;  %v884_v62 = vadd.f32 %v4079_v39, %v4098_v57 }
 0x9f6   :  { %v998_v10 = vmul.f32 1.442695, %v996_v9 }
 0x9f7   :  { %v1007_v14 = vpop.xlane.xlu0 %1006 }
 0x9f8   :  { %3689 = vpow2.f32 %v998_v10 }
 0x9f9   :  { %3691 = vrcp.f32 %v1007_v14 }
 0xa05   :  { %v3690_v11 = vpop.eup %3689 }
 0xa06   :  { %v1002_v12 = vsel %vm357_vm11, %v3690_v11, 0.0  ;;  %v3692_v15 = vpop.eup %3691 }
 0xa07   :  { %1003 = vadd.xlane.f32.xlu0 %v1002_v12  ;;  %v1011_v17 = vmul.f32 %v3692_v15, %v3688_v1 }
 0xa09   :  { %v1013_v23 = vpack.c.bf16 %v1011_v17, %v1011_v17 }
 0xa1d   :  { %1062 = vrot.lane.b32.xlu0 %v3955_v30, %s3795_s15 }
 0xa21   :  { %1160 = vrot.lane.b32.xlu0 %v3951_v26, %s3797_s3 }
 0xa90   :  { %v1004_v16 = vpop.xlane.xlu0 %1003 }
 0xa91   :  { %3693 = vrcp.f32 %v1004_v16 }
 0xa94   :  { %v1063_v18 = vpop.permute.xlu0 %1062 }
 0xa95   :  { %v1068_v21 = vsel %vm482_vm12, %v1063_v18, 0 }
 0xa96   :  { %3395 = vmatpush3.bf16.msra.mxu0 %v1068_v21 }
 0xa97   :  { %3406 = vmatprep.subr.bf16.mxu0 %v3783_v7 }
 0xa98   :  { %v1161_v28 = vpop.permute.xlu0 %1160 }
 0xa99   :  { %3397 = vmatmul.mubr.msk.bf16.vlgmr.msra.gmra.mxu0 %vm357_vm11, %v1013_v23 }
 0xa9a   :  { %3407 = vmatpush3.bf16.xpose.msra.mxu0 %v1168_v24  ;;  %3408 = vmatprep.mubr.msk.bf16.mxu0 %vm3786_vm0, %v3783_v7  ;;  %v274_v24 = vld [vmem:[%s4545_s7 + $0xc] sm:$0xf] }
 0xa9b   :  { %3418 = vmatprep.subr.bf16.mxu0 %v3783_v7 }
 0xa9e   :  { %v3694_v25 = vpop.eup %3693 }
 0xa9f   :  { %v1010_v27 = vmul.f32 %v3694_v25, %v3690_v11  ;;  %v1385_v25 = vsel %vm482_vm12, %v274_v24, 0 }
 0xaa1   :  { %3409 = vmatmul.mubr.msk.bf16.vlgmr.msra.gmra.mxu0 %vm357_vm11, %v1161_v28  ;;  %v1012_v29 = vpack.c.bf16 %v1010_v27, %v1010_v27 }
 0xaa2   :  { %3420 = vmatprep.mubr.msk.bf16.mxu0 %vm3786_vm0, %v3783_v7 }
 0xaa3   :  { %3391 = vmatmul.mubr.msk.bf16.vlgmr.msra.gmra.mxu1 %vm357_vm11, %v1012_v29 }
 0xaa4   :  { %3402 = vmatprep.mubr.msk.bf16.mxu1 %vm3786_vm0, %v3783_v7  ;;  %3401 = vmatpush3.bf16.msra.mxu1 %v1115_v32 }
 0xaa5   :  { %3412 = vmatprep.subr.bf16.mxu1 %v3783_v7 }
 0xb59   :  { %v1104_v33 = vpop.f32.mrf.mxu0 }
 0xb5b   :  { %v3398_v34 = vpop.f32.mrf.mxu0 }
 0xb5d   :  { %v1107_v35 = vpop.f32.mrf.mxu0 }
 0xb5f   :  { %v3399_v36 = vpop.f32.mrf.mxu0 }
 0xb61   :  { %v1204_v37 = vpop.f32.mrf.mxu0 }
 0xb62   :  { %v1205_v40 = vadd.f32 %v1204_v37, %v3976_v44 }
 0xb63   :  { %v1056_v41 = vpop.f32.mrf.mxu1  ;;  %v3410_v43 = vpop.f32.mrf.mxu0 }
 0xb64   :  { %v1110_v45 = vpack.c.bf16 %v1104_v33, %v1056_v41  ;;  %v1260_v46 = vsel %vm357_vm11, %v1205_v40, -inf }
 0xb65   :  { %v3392_v47 = vpop.f32.mrf.mxu1  ;;  %1261 = vmax.xlane.f32.xlu0 %v1260_v46  ;;  %v1207_v48 = vpop.f32.mrf.mxu0 }
 0xb66   :  { %3403 = vmatmul.mubr.msk.bf16.vlgmr.msra.gmra.mxu1 %vm357_vm11, %v1110_v45  ;;  %v4175_v45 = vld [vmem:[%s4549_s11] sm:$0x3f] }
 0xb67   :  { %3413 = vmatpush3.bf16.xpose.msra.mxu1 %v1218_v49  ;;  %v1059_v50 = vpop.f32.mrf.mxu1  ;;  %v3411_v51 = vpop.f32.mrf.mxu0  ;;  %3414 = vmatprep.mubr.msk.bf16.mxu1 %vm3786_vm0, %v3783_v7  ;;  %v1433_v46 = vrot.slane %v4175_v45, %v3929_v8 }
 0xb68   :  { %3424 = vmatprep.subr.bf16.mxu1 %v3783_v7 }
 0xb69   :  { %v3393_v53 = vpop.f32.mrf.mxu1 }
 0xb6e   :  { %3415 = vmatmul.mubr.msk.bf16.vlgmr.msra.gmra.mxu1 %vm357_vm11, %v1211_v54 }
 0xb6f   :  { %3426 = vmatprep.mubr.msk.bf16.mxu1 %vm3786_vm0, %v3783_v7 }
 0xbee   :  { %v1262_v55 = vpop.xlane.xlu0 %1261 }
 0xbef   :  { %v1266_v56 = vsub.f32 %v1205_v40, %v1262_v55 }
 0xbf1   :  { %v1268_v58 = vmul.f32 1.442695, %v1266_v56 }
 0xbf3   :  { %3695 = vpow2.f32 %v1268_v58 }
 0xc00   :  { %v3696_v60 = vpop.eup %3695 }
 0xc01   :  { %v1272_v61 = vsel %vm357_vm11, %v3696_v60, 0.0 }
 0xc02   :  { %1273 = vadd.xlane.f32.xlu0 %v1272_v61 }
 0xc26   :  { %v1151_v63 = vpop.f32.mrf.mxu1 }
 0xc27   :  { %v4141_v0 = vadd.f32 %v1151_v63, %v884_v62 }
 0xc28   :  { %v3404_v1 = vpop.f32.mrf.mxu1 }
 0xc2a   :  { %v1154_v3 = vpop.f32.mrf.mxu1 }
 0xc2b   :  { %v4145_v4 = vadd.f32 %v1154_v3, %v887_v2 }
 0xc2c   :  { %v3405_v5 = vpop.f32.mrf.mxu1 }
 0xc2e   :  { %v1254_v9 = vpop.f32.mrf.mxu1 }
 0xc2f   :  { %v1255_v10 = vadd.f32 %v1254_v9, %v3981_v52 }
 0xc30   :  { %v3416_v11 = vpop.f32.mrf.mxu1 }
 0xc31   :  { %v1263_v12 = vsel %vm357_vm11, %v1255_v10, -inf }
 0xc32   :  { %1264 = vmax.xlane.f32.xlu1 %v1263_v12  ;;  %v1257_v14 = vpop.f32.mrf.mxu1 }
 0xc34   :  { %v3417_v39 = vpop.f32.mrf.mxu1 }
 0xc43   :  { %1284 = vrot.lane.b32.xlu1 %v3951_v26, %s3798_s19 }
 0xc8b   :  { %v1274_v57 = vpop.xlane.xlu0 %1273 }
 0xc8c   :  { %3697 = vrcp.f32 %v1274_v57 }
 0xc99   :  { %v3698_v42 = vpop.eup %3697 }
 0xc9a   :  { %v1280_v17 = vmul.f32 %v3698_v42, %v3696_v60 }
 0xc9c   :  { %v1282_v22 = vpack.c.bf16 %v1280_v17, %v1280_v17  ;;  %v1472_v17 = vsub.s32 2, %v3926_v6 }
 0xcbb   :  { %v1265_v59 = vpop.xlane.xlu1 %1264 }
 0xcbc   :  { %v1267_v15 = vsub.f32 %v1255_v10, %v1265_v59  ;;  %v3654_v10 = vld [vmem:[%s4546_s8] sm:$0xff]  }
 0xcbe   :  { %v1270_v16 = vmul.f32 1.442695, %v1267_v15 }
 0xcbf   :  { %v1285_v18 = vpop.permute.xlu1 %1284 }
 0xcc0   :  { %3699 = vpow2.f32 %v1270_v16  ;;  %v1290_v21 = vsel %vm482_vm12, %v1285_v18, 0  ;;  %v1467_v16 = vrot.slane %v4175_v45, %v3936_v13 }
 0xcc1   :  { %3419 = vmatpush3.bf16.msra.mxu0 %v1290_v21 }
 0xcc2   :  { %3430 = vmatprep.subr.bf16.mxu0 %v3783_v7 }
 0xcc4   :  { %3421 = vmatmul.mubr.msk.bf16.vlgmr.msra.gmra.mxu0 %vm357_vm11, %v1282_v22 }
 0xcc5   :  { %3432 = vmatprep.mubr.msk.bf16.mxu0 %vm3786_vm0, %v3783_v7  ;;  %3431 = vmatpush3.bf16.msra.mxu0 %v1385_v25 }
 0xcc6   :  { %3444 = vmatprep.subr.bf16.mxu0 %v3783_v7 }
 0xccd   :  { %v3700_v26 = vpop.eup %3699 }
 0xcce   :  { %v1275_v23 = vsel %vm357_vm11, %v3700_v26, 0.0 }
 0xccf   :  { %1276 = vadd.xlane.f32.xlu0 %v1275_v23 }
 0xce5   :  { %1332 = vrot.lane.b32.xlu0 %v3955_v30, %s3798_s19 }
 0xd58   :  { %v1277_v27 = vpop.xlane.xlu0 %1276 }
 0xd59   :  { %3701 = vrcp.f32 %v1277_v27 }
 0xd5c   :  { %v1333_v28 = vpop.permute.xlu0 %1332 }
 0xd5d   :  { %v1338_v29 = vsel %vm482_vm12, %v1333_v28, 0  ;;  %v3655_v28 = vld [vmem:[%s4547_s9 + $0x18] sm:$0xff]  }
 0xd5e   :  { %3425 = vmatpush3.bf16.msra.mxu1 %v1338_v29  ;;  %v3656_v29 = vld [vmem:[%s4547_s9 + $0x10] sm:$0xff]  }
 0xd5f   :  { %3436 = vmatprep.subr.bf16.mxu1 %v3783_v7 }
 0xd66   :  { %v3702_v31 = vpop.eup %3701 }
 0xd67   :  { %v1281_v32 = vmul.f32 %v3702_v31, %v3700_v26  ;;  %v1473_v26 = vrot.slane %v4175_v45, %v1472_v17  ;;  %v3657_v31 = vld [vmem:[%s4547_s9 + $0x8] sm:$0xff]  }
 0xd69   :  { %v1283_v30 = vpack.c.bf16 %v1281_v32, %v1281_v32  ;;  %v3658_v32 = vld [vmem:[%s4547_s9] sm:$0xff]  }
 0xd6b   :  { %3427 = vmatmul.mubr.msk.bf16.vlgmr.msra.gmra.mxu1 %vm357_vm11, %v1283_v30  ;;  %v3124_v30 = vld [vmem:[%s4548_s10] ss:$0 sm:$0xff] }
 0xd6c   :  { %3440 = vmatprep.mubr.msk.bf16.mxu1 %vm3786_vm0, %v3783_v7 }
 0xd84   :  { %v1326_v33 = vpop.f32.mrf.mxu0 }
 0xd86   :  { %v3422_v34 = vpop.f32.mrf.mxu0 }
 0xd88   :  { %v1329_v35 = vpop.f32.mrf.mxu0 }
 0xd8a   :  { %v3423_v36 = vpop.f32.mrf.mxu0 }
 0xe2b   :  { %v1374_v37 = vpop.f32.mrf.mxu1 }
 0xe2c   :  { %v1380_v38 = vpack.c.bf16 %v1374_v37, %v1326_v33 }
 0xe2d   :  { %v3428_v40 = vpop.f32.mrf.mxu1 }
 0xe2e   :  { %3433 = vmatmul.mubr.msk.bf16.vlgmr.msra.gmra.mxu0 %vm357_vm11, %v1380_v38 }
 0xe2f   :  { %v1377_v41 = vpop.f32.mrf.mxu1  ;;  %3452 = vmatprep.mubr.msk.bf16.mxu0 %vm3786_vm0, %v3783_v7  ;;  %3445 = vmatpush3.bf16.msra.mxu0 %v3655_v28 }
 0xe30   :  { %3446 = vmatprep.subr.bf16.mxu0 %v3783_v7 }
 0xe31   :  { %v3429_v43 = vpop.f32.mrf.mxu1 }
 0xe33   :  { %3447 = vmatpush3.bf16.msra.mxu0 %v3656_v29 }
 0xe34   :  { %3448 = vmatprep.subr.bf16.mxu0 %v3783_v7 }
 0xe37   :  { %3449 = vmatpush3.bf16.msra.mxu0 %v3657_v31 }
 0xe38   :  { %3450 = vmatprep.subr.bf16.mxu0 %v3783_v7 }
 0xe3b   :  { %3451 = vmatpush3.bf16.msra.mxu0 %v3658_v32 }
 0xe3c   :  { %3470 = vmatprep.subr.bf16.mxu0 %v3783_v7 }
 0xeee   :  { %v1421_v47 = vpop.f32.mrf.mxu0 }
 0xeef   :  { %v1428_v48 = vadd.f32 %v1421_v47, %v4141_v0 }
 0xef0   :  { %v3434_v49 = vpop.f32.mrf.mxu0 }
 0xef1   :  { %v1434_v50 = vadd.f32 %v1433_v46, %v1428_v48 }
 0xef2   :  { %v1424_v51 = vpop.f32.mrf.mxu0 }
 0xef3   :  { %v1429_v53 = vadd.f32 %v1424_v51, %v4145_v4  ;;  %v1436_v54 = vadd.f32 %v1434_v50, %v3939_v19 }
 0xef4   :  { %v3435_v55 = vpop.f32.mrf.mxu0 }
 0xef5   :  { %v1435_v56 = vadd.f32 %v1433_v46, %v1429_v53  ;;  %v1438_v58 = vsel %vm190_vm10, %v1436_v54, 0.0  ;;  %v1552_v55 = vsub.s32 3, %v3926_v6 }
 0xef6   :  { %1439 = vadd.xlane.f32.xlu1 %v1438_v58 }
 0xef7   :  { %v1437_v60 = vadd.f32 %v1435_v56, %v3941_v20  ;;  %v3653_v20 = vld [vmem:[%s4546_s8 + $0x8] sm:$0xff]   ;;  %v1553_v56 = vrot.slane %v4175_v45, %v1552_v55 }
 0xef8   :  { %3437 = vmatpush3.bf16.msra.mxu1 %v3653_v20 }
 0xef9   :  { %v1441_v61 = vsel %vm190_vm10, %v1437_v60, 0.0  ;;  %3438 = vmatprep.subr.bf16.mxu1 %v3783_v7 }
 0xefa   :  { %1442 = vadd.xlane.f32.xlu0 %v1441_v61 }
 0xefc   :  { %3439 = vmatpush3.bf16.msra.mxu1 %v3654_v10 }
 0xefd   :  { %3456 = vmatprep.subr.bf16.mxu1 %v3783_v7 }
 0xf7f   :  { %v1440_v62 = vpop.xlane.xlu1 %1439 }
 0xf80   :  { %v1444_v63 = vmul.f32 0.03125, %v1440_v62 }
 0xf82   :  { %v1446_v0 = vsub.f32 %v1436_v54, %v1444_v63 }
 0xf83   :  { %v1443_v1 = vpop.xlane.xlu0 %1442 }
 0xf84   :  { %v1445_v2 = vmul.f32 0.03125, %v1443_v1  ;;  %v1448_v3 = vmul.f32 %v1446_v0, %v1446_v0 }
 0xf86   :  { %v1447_v5 = vsub.f32 %v1437_v60, %v1445_v2  ;;  %v1450_v4 = vsel %vm190_vm10, %v1448_v3, 0.0 }
 0xf87   :  { %1451 = vadd.xlane.f32.xlu1 %v1450_v4 }
 0xf88   :  { %v1449_v19 = vmul.f32 %v1447_v5, %v1447_v5 }
 0xf8a   :  { %v1453_v9 = vsel %vm190_vm10, %v1449_v19, 0.0 }
 0xf8b   :  { %1454 = vadd.xlane.f32.xlu0 %v1453_v9 }
0x1010   :  { %v1452_v11 = vpop.xlane.xlu1 %1451 }
0x1011   :  { %v1456_v12 = vmul.f32 0.03125, %v1452_v11 }
0x1013   :  { %v1458_v14 = vadd.f32 1e-12, %v1456_v12 }
0x1014   :  { %v1455_v39 = vpop.xlane.xlu0 %1454 }
0x1015   :  { %3703 = vrsqrt.f32 %v1458_v14  ;;  %v1457_v57 = vmul.f32 0.03125, %v1455_v39 }
0x1017   :  { %v1459_v42 = vadd.f32 1e-12, %v1457_v57 }
0x1019   :  { %3705 = vrsqrt.f32 %v1459_v42  ;;  %v3659_v42 = vld [vmem:[%s4543_s5 + $0x18] sm:$0xff]  }
0x1022   :  { %v3704_v59 = vpop.eup %3703 }
0x1023   :  { %v1462_v15 = vmul.f32 %v3704_v59, %v1446_v0  ;;  %v3660_v59 = vld [vmem:[%s4543_s5 + $0x10] sm:$0xff]  }
0x1025   :  { %v1468_v22 = vmul.f32 %v1467_v16, %v1462_v15 }
0x1026   :  { %v3706_v18 = vpop.eup %3705 }
0x1027   :  { %v1463_v21 = vmul.f32 %v3706_v18, %v1447_v5  ;;  %v1474_v24 = vadd.f32 %v1473_v26, %v1468_v22 }
0x1029   :  { %v1469_v23 = vmul.f32 %v1467_v16, %v1463_v21 }
0x102b   :  { %v1475_v25 = vadd.f32 %v1473_v26, %v1469_v23  ;;  %v1652_v23 = vsub.s32 4, %v3926_v6 }
0x102d   :  { %v1476_v27 = vpack.c.bf16 %v1475_v25, %v1474_v24 }
0x102f   :  { %3441 = vmatmul.mubr.msk.bf16.vlgmr.msra.gmra.mxu1 %vm190_vm10, %v1476_v27 }
0x1030   :  { %3460 = vmatprep.mubr.msk.bf16.mxu1 %vm3786_vm0, %v3783_v7  ;;  %3457 = vmatpush3.bf16.msra.mxu1 %v3659_v42 }
0x1031   :  { %3458 = vmatprep.subr.bf16.mxu1 %v3783_v7 }
0x1034   :  { %3459 = vmatpush3.bf16.msra.mxu1 %v3660_v59 }
0x1035   :  { %3464 = vmatprep.subr.bf16.mxu1 %v3783_v7 }
0x10ef   :  { %v1532_v33 = vpop.f32.mrf.mxu1 }
0x10f0   :  { %v1533_v34 = vadd.f32 %v3124_v30, %v1532_v33 }
0x10f1   :  { %v3442_v35 = vpop.f32.mrf.mxu1 }
0x10f2   :  { %v1541_v36 = vmul.f32 0.70710677, %v1533_v34  ;;  %v1539_v48 = vmul.f32 0.5, %v1533_v34 }
0x10f3   :  { %v1535_v37 = vpop.f32.mrf.mxu1 }
0x10f4   :  { %3707 = verf.f32 %v1541_v36  ;;  %v1536_v38 = vadd.f32 %v3124_v30, %v1535_v37 }
0x10f5   :  { %v3443_v40 = vpop.f32.mrf.mxu1 }
0x10f6   :  { %v1542_v41 = vmul.f32 0.70710677, %v1536_v38  ;;  %v1540_v49 = vmul.f32 0.5, %v1536_v38 }
0x10f8   :  { %3709 = verf.f32 %v1542_v41 }
0x1101   :  { %v3708_v43 = vpop.eup %3707 }
0x1102   :  { %v1545_v46 = vadd.f32 1.0, %v3708_v43 }
0x1104   :  { %v1547_v51 = vmul.f32 %v1545_v46, %v1539_v48 }
0x1105   :  { %v3710_v47 = vpop.eup %3709 }
0x1106   :  { %v1546_v50 = vadd.f32 1.0, %v3710_v47 }
0x1108   :  { %v1548_v53 = vmul.f32 %v1546_v50, %v1540_v49 }
0x110a   :  { %v1549_v54 = vpack.c.bf16 %v1548_v53, %v1547_v51 }
0x110c   :  { %3453 = vmatmul.mubr.msk.bf16.vlgmr.msra.gmra.mxu0 %vm145_vm9, %v1549_v54 }
0x110d   :  { %3472 = vmatprep.mubr.msk.bf16.mxu0 %vm3786_vm0, %v3783_v7 }
0x11cc   :  { %v1615_v58 = vpop.f32.mrf.mxu0 }
0x11cd   :  { %v1616_v60 = vadd.f32 %v1615_v58, %v1553_v56 }
0x11ce   :  { %v3454_v61 = vpop.f32.mrf.mxu0 }
0x11cf   :  { %v1622_v62 = vadd.f32 %v1616_v60, %v1474_v24  ;;  %v1658_v24 = vsub.s32 5, %v3926_v6 }
0x11d0   :  { %v1618_v63 = vpop.f32.mrf.mxu0 }
0x11d1   :  { %v1619_v0 = vadd.f32 %v1618_v63, %v1553_v56  ;;  %v1624_v1 = vsel %vm190_vm10, %v1622_v62, 0.0  ;;  %v1659_v28 = vrot.slane %v4175_v45, %v1658_v24 }
0x11d2   :  { %1625 = vadd.xlane.f32.xlu1 %v1624_v1  ;;  %v3455_v2 = vpop.f32.mrf.mxu0 }
0x11d3   :  { %v1623_v3 = vadd.f32 %v1619_v0, %v1475_v25  ;;  %v1653_v25 = vrot.slane %v4175_v45, %v1652_v23 }
0x11d5   :  { %v1627_v5 = vsel %vm190_vm10, %v1623_v3, 0.0 }
0x11d6   :  { %1628 = vadd.xlane.f32.xlu0 %v1627_v5 }
0x125b   :  { %v1626_v4 = vpop.xlane.xlu1 %1625 }
0x125c   :  { %v1630_v19 = vmul.f32 0.03125, %v1626_v4 }
0x125e   :  { %v1632_v9 = vsub.f32 %v1622_v62, %v1630_v19  ;;  %v3156_v62 = vld [vmem:[%s4544_s6 + $0x1] ss:$0 sm:$0xff] }
0x125f   :  { %v1629_v20 = vpop.xlane.xlu0 %1628 }
0x1260   :  { %v1631_v10 = vmul.f32 0.03125, %v1629_v20  ;;  %v1634_v11 = vmul.f32 %v1632_v9, %v1632_v9 }
0x1262   :  { %v1633_v12 = vsub.f32 %v1623_v3, %v1631_v10  ;;  %v1636_v14 = vsel %vm190_vm10, %v1634_v11, 0.0 }
0x1263   :  { %1637 = vadd.xlane.f32.xlu1 %v1636_v14 }
0x1264   :  { %v1635_v39 = vmul.f32 %v1633_v12, %v1633_v12 }
0x1266   :  { %v1639_v57 = vsel %vm190_vm10, %v1635_v39, 0.0 }
0x1267   :  { %1640 = vadd.xlane.f32.xlu0 %v1639_v57 }
0x12ec   :  { %v1638_v15 = vpop.xlane.xlu1 %1637 }
0x12ed   :  { %v1642_v16 = vmul.f32 0.03125, %v1638_v15 }
0x12ef   :  { %v1644_v18 = vadd.f32 1e-12, %v1642_v16 }
0x12f0   :  { %v1641_v21 = vpop.xlane.xlu0 %1640 }
0x12f1   :  { %3711 = vrsqrt.f32 %v1644_v18  ;;  %v1643_v22 = vmul.f32 0.03125, %v1641_v21 }
0x12f3   :  { %v1645_v26 = vadd.f32 1e-12, %v1643_v22 }
0x12f5   :  { %3713 = vrsqrt.f32 %v1645_v26 }
0x12fe   :  { %v3712_v27 = vpop.eup %3711 }
0x12ff   :  { %v1648_v29 = vmul.f32 %v3712_v27, %v1632_v9 }
0x1301   :  { %v1654_v31 = vmul.f32 %v1653_v25, %v1648_v29 }
0x1302   :  { %v3714_v32 = vpop.eup %3713 }
0x1303   :  { %v1660_v30 = vadd.f32 %v1659_v28, %v1654_v31  ;;  %v1649_v33 = vmul.f32 %v3714_v32, %v1633_v12 }
0x1305   :  { %v1655_v34 = vmul.f32 %v1653_v25, %v1649_v33  ;;  %v3606_v35 = vcvt.f32.s32 %v1660_v30  ;;  %v3604_v38 = vand.u32 2147483647, %v1660_v30  ;;  %v3609_v41 = vand.u32 2147483648, %v1660_v30 }
0x1307   :  { %v1661_v36 = vadd.f32 %v1659_v28, %v1655_v34  ;;  %v3607_v37 = vcvt.s32.f32 %v3606_v35  ;;  %vm3605_vm13 = vcmp.lt.f32.partialorder %v3604_v38, 8388608.0 }
0x1309   :  { %v3608_v40 = vand.u32 2147483647, %v3607_v37  ;;  %v3614_v43 = vcvt.f32.s32 %v1661_v36  ;;  %v3612_v48 = vand.u32 2147483647, %v1661_v36  ;;  %v3617_v45 = vand.u32 2147483648, %v1661_v36 }
0x130b   :  { %v3610_v46 = vor.u32 %v3609_v41, %v3608_v40  ;;  %v3615_v47 = vcvt.s32.f32 %v3614_v43  ;;  %vm3613_vm14 = vcmp.lt.f32.partialorder %v3612_v48, 8388608.0 }
0x130d   :  { %v3611_v49 = vsel %vm3605_vm13, %v3610_v46, %v1660_v30  ;;  %v3616_v50 = vand.u32 2147483647, %v3615_v47 }
0x130e   :  { %v4250_v53 = vmax.f32 %v3611_v49, -128.0 }
0x130f   :  { %v3618_v51 = vor.u32 %v3617_v45, %v3616_v50 }
0x1310   :  { %v1666_v58 = vmin.f32 %v4250_v53, 127.0 }
0x1311   :  { %v3619_v54 = vsel %vm3613_vm14, %v3618_v51, %v1661_v36 }
0x1312   :  { %v4252_v56 = vmax.f32 %v3619_v54, -128.0 }
0x1314   :  { %v1667_v60 = vmin.f32 %v4252_v56, 127.0  ;;  %v3661_v56 = vld [vmem:[%s4546_s8 + $0x18] sm:$0xff]  }
0x1316   :  { %v1698_v61 = vpack.c.bf16 %v1667_v60, %v1666_v58 }
0x1318   :  { %3461 = vmatmul.mubr.msk.bf16.vlgmr.msra.gmra.mxu1 %vm190_vm10, %v1698_v61 }
0x1319   :  { %3466 = vmatprep.mubr.msk.bf16.mxu1 %vm3786_vm0, %v3783_v7 }
0x13d8   :  { %v1754_v63 = vpop.f32.mrf.mxu1 }
0x13d9   :  { %v1755_v0 = vadd.f32 %v3156_v62, %v1754_v63 }
0x13da   :  { %v3462_v1 = vpop.f32.mrf.mxu1 }
0x13db   :  { %v4266_v2 = vpack.c.bf16 %v1755_v0, %v1755_v0 }
0x13dc   :  { %v1757_v3 = vpop.f32.mrf.mxu1 }
0x13dd   :  { %v1758_v5 = vadd.f32 %v3156_v62, %v1757_v3  ;;  %1764 = vrot.lane.b32.xlu1 %v4266_v2, %s3787_s23 }
0x13de   :  { %v3463_v4 = vpop.f32.mrf.mxu1 }
0x13df   :  { %v4270_v19 = vpack.c.bf16 %v1758_v5, %v1758_v5 }
0x13e1   :  { %1813 = vrot.lane.b32.xlu0 %v4270_v19, %s3787_s23 }
0x144f   :  { %v1765_v9 = vpop.permute.xlu1 %1764 }
0x1450   :  { %v1770_v20 = vsel %vm357_vm11, %v1765_v9, 0 }
0x1451   :  { %3465 = vmatpush3.bf16.xpose.msra.mxu1 %v1770_v20 }
0x1452   :  { %3476 = vmatprep.subr.bf16.mxu1 %v3783_v7 }
0x1453   :  { %v1814_v10 = vpop.permute.xlu0 %1813 }
0x1454   :  { %v1819_v11 = vsel %vm357_vm11, %v1814_v10, 0 }
0x1455   :  { %3471 = vmatpush3.bf16.xpose.msra.mxu0 %v1819_v11 }
0x1456   :  { %3482 = vmatprep.subr.bf16.mxu0 %v3783_v7 }
0x1458   :  { %3467 = vmatmul.mubr.msk.bf16.vlgmr.msra.gmra.mxu1 %vm357_vm11, %v4266_v2 }
0x1459   :  { %3478 = vmatprep.mubr.msk.bf16.mxu1 %vm3786_vm0, %v3783_v7 }
0x145c   :  { %3473 = vmatmul.mubr.msk.bf16.vlgmr.msra.gmra.mxu0 %vm357_vm11, %v4270_v19 }
0x145d   :  { %3484 = vmatprep.mubr.msk.bf16.mxu0 %vm3786_vm0, %v3783_v7 }
0x1518   :  { %v1806_v12 = vpop.f32.mrf.mxu1 }
0x1519   :  { %v1807_v14 = vadd.f32 %v1806_v12, %v3976_v44 }
0x151a   :  { %v3468_v39 = vpop.f32.mrf.mxu1 }
0x151b   :  { %v1861_v57 = vsel %vm357_vm11, %v1807_v14, -inf }
0x151c   :  { %1862 = vmax.xlane.f32.xlu1 %v1861_v57  ;;  %v1809_v42 = vpop.f32.mrf.mxu1  ;;  %v1855_v59 = vpop.f32.mrf.mxu0 }
0x151d   :  { %v1856_v15 = vadd.f32 %v1855_v59, %v3981_v52 }
0x151e   :  { %v3469_v16 = vpop.f32.mrf.mxu1  ;;  %v3474_v18 = vpop.f32.mrf.mxu0 }
0x151f   :  { %v1864_v21 = vsel %vm357_vm11, %v1856_v15, -inf }
0x1520   :  { %1865 = vmax.xlane.f32.xlu0 %v1864_v21  ;;  %v1858_v22 = vpop.f32.mrf.mxu0 }
0x1522   :  { %v3475_v26 = vpop.f32.mrf.mxu0 }
0x152d   :  { %1885 = vrot.lane.b32.xlu1 %v4266_v2, %s3789_s1 }
0x15a5   :  { %v1863_v25 = vpop.xlane.xlu1 %1862 }
0x15a6   :  { %v1867_v27 = vsub.f32 %v1807_v14, %v1863_v25 }
0x15a8   :  { %v1869_v28 = vmul.f32 1.442695, %v1867_v27 }
0x15a9   :  { %v1886_v29 = vpop.permute.xlu1 %1885  ;;  %v1866_v31 = vpop.xlane.xlu0 %1865 }
0x15aa   :  { %3715 = vpow2.f32 %v1869_v28  ;;  %v1891_v32 = vsel %vm482_vm12, %v1886_v29, 0  ;;  %v1868_v30 = vsub.f32 %v1856_v15, %v1866_v31 }
0x15ab   :  { %3477 = vmatpush3.bf16.msra.mxu1 %v1891_v32 }
0x15ac   :  { %v1871_v33 = vmul.f32 1.442695, %v1868_v30  ;;  %3488 = vmatprep.subr.bf16.mxu1 %v3783_v7 }
0x15ae   :  { %3717 = vpow2.f32 %v1871_v33 }
0x15b7   :  { %v3716_v34 = vpop.eup %3715 }
0x15b8   :  { %v1873_v35 = vsel %vm357_vm11, %v3716_v34, 0.0 }
0x15b9   :  { %1874 = vadd.xlane.f32.xlu1 %v1873_v35 }
0x15bb   :  { %v3718_v36 = vpop.eup %3717 }
0x15bc   :  { %v1876_v37 = vsel %vm357_vm11, %v3718_v36, 0.0 }
0x15bd   :  { %1877 = vadd.xlane.f32.xlu0 %v1876_v37 }
0x15ca   :  { %1984 = vrot.lane.b32.xlu1 %v4266_v2, %s3790_s26 }
0x15ce   :  { %2034 = vrot.lane.b32.xlu1 %v4270_v19, %s3790_s26 }
0x15d2   :  { %2032 = vrot.lane.b32.xlu1 %v4270_v19, %s3791_s0 }
0x15d3   :  { %1933 = vrot.lane.b32.xlu0 %v4270_v19, %s3789_s1 }
0x15d7   :  { %1982 = vrot.lane.b32.xlu0 %v4266_v2, %s3791_s0 }
0x1642   :  { %v1875_v38 = vpop.xlane.xlu1 %1874 }
0x1643   :  { %3719 = vrcp.f32 %v1875_v38 }
0x1646   :  { %v1878_v40 = vpop.xlane.xlu0 %1877  ;;  %v1985_v47 = vpop.permute.xlu1 %1984 }
0x1647   :  { %3721 = vrcp.f32 %v1878_v40  ;;  %v1990_v45 = vsel %vm357_vm11, %v1985_v47, 0 }
0x164a   :  { %v1934_v41 = vpop.permute.xlu0 %1933  ;;  %v2035_v54 = vpop.permute.xlu1 %2034 }
0x164b   :  { %v1939_v43 = vsel %vm482_vm12, %v1934_v41, 0  ;;  %v2040_v62 = vsel %vm357_vm11, %v2035_v54, 0 }
0x164c   :  { %3483 = vmatpush3.bf16.msra.mxu0 %v1939_v43 }
0x164d   :  { %3494 = vmatprep.subr.bf16.mxu0 %v3783_v7 }
0x164e   :  { %v1983_v63 = vpop.permute.xlu0 %1982  ;;  %v2033_v0 = vpop.permute.xlu1 %2032 }
0x1650   :  { %v3720_v46 = vpop.eup %3719 }
0x1651   :  { %v1881_v48 = vmul.f32 %v3720_v46, %v3716_v34 }
0x1653   :  { %v1883_v49 = vpack.c.bf16 %v1881_v48, %v1881_v48 }
0x1654   :  { %v3722_v50 = vpop.eup %3721 }
0x1655   :  { %3479 = vmatmul.mubr.msk.bf16.vlgmr.msra.gmra.mxu1 %vm357_vm11, %v1883_v49  ;;  %v1882_v51 = vmul.f32 %v3722_v50, %v3718_v36 }
0x1656   :  { %3489 = vmatpush3.bf16.xpose.msra.mxu1 %v1990_v45  ;;  %3490 = vmatprep.mubr.msk.bf16.mxu1 %vm3786_vm0, %v3783_v7  ;;  %v3138_v45 = vld [vmem:[%s4545_s7 + $0x10] sm:$0xf] }
0x1657   :  { %v1884_v61 = vpack.c.bf16 %v1882_v51, %v1882_v51  ;;  %3500 = vmatprep.subr.bf16.mxu1 %v3783_v7 }
0x1659   :  { %3485 = vmatmul.mubr.msk.bf16.vlgmr.msra.gmra.mxu0 %vm357_vm11, %v1884_v61  ;;  %v2254_v61 = vsel %vm482_vm12, %v3138_v45, 0 }
0x165a   :  { %3495 = vmatpush3.bf16.xpose.msra.mxu0 %v2040_v62  ;;  %3496 = vmatprep.mubr.msk.bf16.mxu0 %vm3786_vm0, %v3783_v7 }
0x165b   :  { %3506 = vmatprep.subr.bf16.mxu0 %v3783_v7 }
0x165d   :  { %3491 = vmatmul.mubr.msk.bf16.vlgmr.msra.gmra.mxu1 %vm357_vm11, %v1983_v63 }
0x165e   :  { %3502 = vmatprep.mubr.msk.bf16.mxu1 %vm3786_vm0, %v3783_v7 }
0x1661   :  { %3497 = vmatmul.mubr.msk.bf16.vlgmr.msra.gmra.mxu0 %vm357_vm11, %v2033_v0 }
0x1662   :  { %3508 = vmatprep.mubr.msk.bf16.mxu0 %vm3786_vm0, %v3783_v7 }
0x1715   :  { %v4324_v1 = vpop.f32.mrf.mxu1 }
0x1717   :  { %v3480_v3 = vpop.f32.mrf.mxu1 }
0x1719   :  { %v1930_v5 = vpop.f32.mrf.mxu1  ;;  %v4326_v4 = vpop.f32.mrf.mxu0 }
0x171a   :  { %v1981_v9 = vpack.c.bf16 %v4326_v4, %v4324_v1  ;;  %v3139_v5 = vld [vmem:[%s4545_s7 + $0x14] sm:$0xf] }
0x171b   :  { %v3481_v20 = vpop.f32.mrf.mxu1  ;;  %v3486_v10 = vpop.f32.mrf.mxu0  ;;  %v2207_v1 = vsel %vm482_vm12, %v3139_v5, 0 }
0x171d   :  { %v1978_v11 = vpop.f32.mrf.mxu0  ;;  %v2026_v12 = vpop.f32.mrf.mxu1 }
0x171e   :  { %v2027_v14 = vadd.f32 %v2026_v12, %v3976_v44 }
0x171f   :  { %v3487_v39 = vpop.f32.mrf.mxu0  ;;  %v3492_v57 = vpop.f32.mrf.mxu1 }
0x1720   :  { %v2082_v42 = vsel %vm357_vm11, %v2027_v14, -inf }
0x1721   :  { %2083 = vmax.xlane.f32.xlu0 %v2082_v42  ;;  %v2029_v59 = vpop.f32.mrf.mxu1  ;;  %v2076_v15 = vpop.f32.mrf.mxu0 }
0x1722   :  { %v2077_v16 = vadd.f32 %v2076_v15, %v3981_v52 }
0x1723   :  { %v3493_v18 = vpop.f32.mrf.mxu1  ;;  %v3498_v21 = vpop.f32.mrf.mxu0 }
0x1724   :  { %v2085_v22 = vsel %vm357_vm11, %v2077_v16, -inf }
0x1725   :  { %2086 = vmax.xlane.f32.xlu1 %v2085_v22  ;;  %v2079_v26 = vpop.f32.mrf.mxu0 }
0x1727   :  { %v3499_v25 = vpop.f32.mrf.mxu0 }
0x1736   :  { %2106 = vrot.lane.b32.xlu1 %v4266_v2, %s3792_s27 }
0x173a   :  { %2299 = vrot.lane.b32.xlu1 %v4266_v2, %s3793_s28 }
0x173e   :  { %2349 = vrot.lane.b32.xlu1 %v4270_v19, %s3793_s28 }
0x1742   :  { %2347 = vrot.lane.b32.xlu1 %v4270_v19, %s3794_s29 }
0x17aa   :  { %v2084_v27 = vpop.xlane.xlu0 %2083 }
0x17ab   :  { %v2088_v28 = vsub.f32 %v2027_v14, %v2084_v27 }
0x17ad   :  { %v2090_v29 = vmul.f32 1.442695, %v2088_v28 }
0x17ae   :  { %v2087_v31 = vpop.xlane.xlu1 %2086 }
0x17af   :  { %3723 = vpow2.f32 %v2090_v29  ;;  %v2089_v32 = vsub.f32 %v2077_v16, %v2087_v31 }
0x17b1   :  { %v2092_v30 = vmul.f32 1.442695, %v2089_v32 }
0x17b2   :  { %v2107_v33 = vpop.permute.xlu1 %2106 }
0x17b3   :  { %3725 = vpow2.f32 %v2092_v30  ;;  %v2112_v34 = vsel %vm482_vm12, %v2107_v33, 0 }
0x17b4   :  { %3501 = vmatpush3.bf16.msra.mxu1 %v2112_v34 }
0x17b5   :  { %3512 = vmatprep.subr.bf16.mxu1 %v3783_v7 }
0x17b6   :  { %v2300_v62 = vpop.permute.xlu1 %2299 }
0x17b7   :  { %v2305_v39 = vsel %vm357_vm11, %v2300_v62, 0 }
0x17ba   :  { %v2350_v63 = vpop.permute.xlu1 %2349 }
0x17bb   :  { %v2355_v0 = vsel %vm357_vm11, %v2350_v63, 0 }
0x17bc   :  { %v3724_v35 = vpop.eup %3723 }
0x17bd   :  { %v2094_v36 = vsel %vm357_vm11, %v3724_v35, 0.0 }
0x17be   :  { %2095 = vadd.xlane.f32.xlu0 %v2094_v36  ;;  %v2348_v3 = vpop.permute.xlu1 %2347 }
0x17c0   :  { %v3726_v37 = vpop.eup %3725 }
0x17c1   :  { %v2097_v38 = vsel %vm357_vm11, %v3726_v37, 0.0 }
0x17c2   :  { %2098 = vadd.xlane.f32.xlu0 %v2097_v38 }
0x17d8   :  { %2154 = vrot.lane.b32.xlu0 %v4270_v19, %s3792_s27 }
0x17dc   :  { %2297 = vrot.lane.b32.xlu0 %v4266_v2, %s3794_s29 }
0x1847   :  { %v2096_v40 = vpop.xlane.xlu0 %2095 }
0x1848   :  { %3727 = vrcp.f32 %v2096_v40 }
0x184b   :  { %v2099_v41 = vpop.xlane.xlu0 %2098 }
0x184c   :  { %3729 = vrcp.f32 %v2099_v41 }
0x184f   :  { %v2155_v43 = vpop.permute.xlu0 %2154 }
0x1850   :  { %v2160_v46 = vsel %vm482_vm12, %v2155_v43, 0 }
0x1851   :  { %3507 = vmatpush3.bf16.msra.mxu0 %v2160_v46 }
0x1852   :  { %3518 = vmatprep.subr.bf16.mxu0 %v3783_v7 }
0x1853   :  { %v2298_v15 = vpop.permute.xlu0 %2297 }
0x1855   :  { %v3728_v47 = vpop.eup %3727 }
0x1856   :  { %v2102_v48 = vmul.f32 %v3728_v47, %v3724_v35 }
0x1858   :  { %v2104_v49 = vpack.c.bf16 %v2102_v48, %v2102_v48 }
0x1859   :  { %v3730_v50 = vpop.eup %3729 }
0x185a   :  { %3503 = vmatmul.mubr.msk.bf16.vlgmr.msra.gmra.mxu1 %vm357_vm11, %v2104_v49  ;;  %v2103_v51 = vmul.f32 %v3730_v50, %v3726_v37 }
0x185b   :  { %3514 = vmatprep.mubr.msk.bf16.mxu1 %vm3786_vm0, %v3783_v7  ;;  %3513 = vmatpush3.bf16.msra.mxu1 %v2207_v1 }
0x185c   :  { %v2105_v54 = vpack.c.bf16 %v2103_v51, %v2103_v51  ;;  %3524 = vmatprep.subr.bf16.mxu1 %v3783_v7 }
0x185e   :  { %3509 = vmatmul.mubr.msk.bf16.vlgmr.msra.gmra.mxu0 %vm357_vm11, %v2105_v54 }
0x185f   :  { %3519 = vmatpush3.bf16.msra.mxu0 %v2254_v61  ;;  %3520 = vmatprep.mubr.msk.bf16.mxu0 %vm3786_vm0, %v3783_v7 }
0x1860   :  { %3530 = vmatprep.subr.bf16.mxu0 %v3783_v7 }
0x1866   :  { %3521 = vmatmul.mubr.msk.bf16.vlgmr.msra.gmra.mxu0 %vm357_vm11, %v1981_v9 }
0x1867   :  { %3531 = vmatpush3.bf16.xpose.msra.mxu0 %v2355_v0  ;;  %3532 = vmatprep.mubr.msk.bf16.mxu0 %vm3786_vm0, %v3783_v7 }
0x1868   :  { %3542 = vmatprep.subr.bf16.mxu0 %v3783_v7 }
0x186e   :  { %3533 = vmatmul.mubr.msk.bf16.vlgmr.msra.gmra.mxu0 %vm357_vm11, %v2348_v3 }
0x186f   :  { %3544 = vmatprep.mubr.msk.bf16.mxu0 %vm3786_vm0, %v3783_v7 }
0x191a   :  { %v2148_v4 = vpop.f32.mrf.mxu1 }
0x191c   :  { %v3504_v9 = vpop.f32.mrf.mxu1 }
0x191e   :  { %v2151_v20 = vpop.f32.mrf.mxu1  ;;  %v2196_v10 = vpop.f32.mrf.mxu0 }
0x191f   :  { %v2202_v11 = vpack.c.bf16 %v2196_v10, %v2148_v4 }
0x1920   :  { %v3505_v12 = vpop.f32.mrf.mxu1  ;;  %v3510_v14 = vpop.f32.mrf.mxu0 }
0x1921   :  { %3515 = vmatmul.mubr.msk.bf16.vlgmr.msra.gmra.mxu1 %vm357_vm11, %v2202_v11 }
0x1922   :  { %3525 = vmatpush3.bf16.xpose.msra.mxu1 %v2305_v39  ;;  %v2199_v57 = vpop.f32.mrf.mxu0  ;;  %3526 = vmatprep.mubr.msk.bf16.mxu1 %vm3786_vm0, %v3783_v7 }
0x1923   :  { %3536 = vmatprep.subr.bf16.mxu1 %v3783_v7  ;;  %v3140_v57 = vld [vmem:[%s4545_s7 + $0x18] sm:$0xf] }
0x1924   :  { %v3511_v42 = vpop.f32.mrf.mxu0 }
0x1925   :  { %v2522_v42 = vsel %vm482_vm12, %v3140_v57, 0 }
0x1926   :  { %v4384_v59 = vpop.f32.mrf.mxu0 }
0x1928   :  { %v3522_v16 = vpop.f32.mrf.mxu0 }
0x1929   :  { %3527 = vmatmul.mubr.msk.bf16.vlgmr.msra.gmra.mxu1 %vm357_vm11, %v2298_v15 }
0x192a   :  { %v4387_v18 = vpop.f32.mrf.mxu0  ;;  %3538 = vmatprep.mubr.msk.bf16.mxu1 %vm3786_vm0, %v3783_v7 }
0x192c   :  { %v3523_v21 = vpop.f32.mrf.mxu0 }
0x192e   :  { %v2391_v22 = vpop.f32.mrf.mxu0 }
0x192f   :  { %v2392_v26 = vadd.f32 %v2391_v22, %v3981_v52 }
0x1930   :  { %v3534_v25 = vpop.f32.mrf.mxu0 }
0x1931   :  { %v2400_v27 = vsel %vm357_vm11, %v2392_v26, -inf }
0x1932   :  { %2401 = vmax.xlane.f32.xlu1 %v2400_v27  ;;  %v2394_v28 = vpop.f32.mrf.mxu0 }
0x1934   :  { %v3535_v29 = vpop.f32.mrf.mxu0 }
0x1943   :  { %2421 = vrot.lane.b32.xlu1 %v4266_v2, %s3795_s15 }
0x1947   :  { %2569 = vrot.lane.b32.xlu1 %v4266_v2, %s3796_s16 }
0x194b   :  { %2619 = vrot.lane.b32.xlu1 %v4270_v19, %s3796_s16 }
0x194f   :  { %2617 = vrot.lane.b32.xlu1 %v4270_v19, %s3797_s3 }
0x19bb   :  { %v2402_v31 = vpop.xlane.xlu1 %2401 }
0x19bc   :  { %v2404_v33 = vsub.f32 %v2392_v26, %v2402_v31 }
0x19be   :  { %v2407_v34 = vmul.f32 1.442695, %v2404_v33 }
0x19bf   :  { %v2422_v32 = vpop.permute.xlu1 %2421 }
0x19c0   :  { %v2427_v30 = vsel %vm482_vm12, %v2422_v32, 0  ;;  %3731 = vpow2.f32 %v2407_v34 }
0x19c1   :  { %3537 = vmatpush3.bf16.msra.mxu1 %v2427_v30 }
0x19c2   :  { %3548 = vmatprep.subr.bf16.mxu1 %v3783_v7 }
0x19c3   :  { %v2570_v9 = vpop.permute.xlu1 %2569 }
0x19c4   :  { %v2575_v10 = vsel %vm357_vm11, %v2570_v9, 0 }
0x19c7   :  { %v2620_v25 = vpop.permute.xlu1 %2619 }
0x19c8   :  { %v2625_v34 = vsel %vm357_vm11, %v2620_v25, 0 }
0x19cd   :  { %v3732_v47 = vpop.eup %3731 }
0x19ce   :  { %v2412_v50 = vsel %vm357_vm11, %v3732_v47, 0.0 }
0x19e1   :  { %v4403_v35 = vpop.f32.mrf.mxu1 }
0x19e3   :  { %v3516_v36 = vpop.f32.mrf.mxu1 }
0x19e5   :  { %v4405_v37 = vpop.f32.mrf.mxu1 }
0x19e7   :  { %v3517_v38 = vpop.f32.mrf.mxu1 }
0x19e9   :  { %v2341_v40 = vpop.f32.mrf.mxu1 }
0x19ea   :  { %v2342_v41 = vadd.f32 %v2341_v40, %v3976_v44  ;;  %v2618_v40 = vpop.permute.xlu1 %2617 }
0x19eb   :  { %v3528_v43 = vpop.f32.mrf.mxu1 }
0x19ec   :  { %v2397_v46 = vsel %vm357_vm11, %v2342_v41, -inf }
0x19ed   :  { %2398 = vmax.xlane.f32.xlu0 %v2397_v46  ;;  %v2344_v48 = vpop.f32.mrf.mxu1 }
0x19ef   :  { %v3529_v49 = vpop.f32.mrf.mxu1 }
0x19f0   :  { %v2291_v49 = vadd.f32 %v4384_v59, %v4403_v35 }
0x19f1   :  { %2413 = vadd.xlane.f32.xlu0 %v2412_v50 }
0x1a76   :  { %v2399_v45 = vpop.xlane.xlu0 %2398 }
0x1a77   :  { %v2403_v51 = vsub.f32 %v2342_v41, %v2399_v45 }
0x1a79   :  { %v2405_v54 = vmul.f32 1.442695, %v2403_v51 }
0x1a7a   :  { %v2414_v63 = vpop.xlane.xlu0 %2413 }
0x1a7b   :  { %3733 = vpow2.f32 %v2405_v54  ;;  %v2294_v54 = vadd.f32 %v4387_v18, %v4405_v37 }
0x1a7c   :  { %3735 = vrcp.f32 %v2414_v63 }
0x1a88   :  { %v3734_v61 = vpop.eup %3733 }
0x1a89   :  { %v2409_v62 = vsel %vm357_vm11, %v3734_v61, 0.0  ;;  %v3736_v0 = vpop.eup %3735 }
0x1a8a   :  { %2410 = vadd.xlane.f32.xlu0 %v2409_v62  ;;  %v2418_v5 = vmul.f32 %v3736_v0, %v3732_v47 }
0x1a8c   :  { %v2420_v20 = vpack.c.bf16 %v2418_v5, %v2418_v5 }
0x1aa0   :  { %2469 = vrot.lane.b32.xlu0 %v4270_v19, %s3795_s15 }
0x1aa4   :  { %2567 = vrot.lane.b32.xlu0 %v4266_v2, %s3797_s3 }
0x1b13   :  { %v2411_v3 = vpop.xlane.xlu0 %2410 }
0x1b14   :  { %3737 = vrcp.f32 %v2411_v3 }
0x1b17   :  { %v2470_v1 = vpop.permute.xlu0 %2469 }
0x1b18   :  { %v2475_v4 = vsel %vm482_vm12, %v2470_v1, 0 }
0x1b19   :  { %3543 = vmatpush3.bf16.msra.mxu0 %v2475_v4 }
0x1b1a   :  { %3554 = vmatprep.subr.bf16.mxu0 %v3783_v7 }
0x1b1b   :  { %v2568_v14 = vpop.permute.xlu0 %2567 }
0x1b1c   :  { %3545 = vmatmul.mubr.msk.bf16.vlgmr.msra.gmra.mxu0 %vm357_vm11, %v2420_v20 }
0x1b1d   :  { %3555 = vmatpush3.bf16.xpose.msra.mxu0 %v2575_v10  ;;  %3556 = vmatprep.mubr.msk.bf16.mxu0 %vm3786_vm0, %v3783_v7 }
0x1b1e   :  { %3566 = vmatprep.subr.bf16.mxu0 %v3783_v7 }
0x1b21   :  { %v3738_v11 = vpop.eup %3737 }
0x1b22   :  { %v2417_v12 = vmul.f32 %v3738_v11, %v3734_v61 }
0x1b24   :  { %3557 = vmatmul.mubr.msk.bf16.vlgmr.msra.gmra.mxu0 %vm357_vm11, %v2568_v14  ;;  %v2419_v39 = vpack.c.bf16 %v2417_v12, %v2417_v12 }
0x1b25   :  { %3568 = vmatprep.mubr.msk.bf16.mxu0 %vm3786_vm0, %v3783_v7 }
0x1b26   :  { %3539 = vmatmul.mubr.msk.bf16.vlgmr.msra.gmra.mxu1 %vm357_vm11, %v2419_v39  ;;  %v3141_v39 = vld [vmem:[%s4545_s7 + $0x1c] sm:$0xf] }
0x1b27   :  { %3550 = vmatprep.mubr.msk.bf16.mxu1 %vm3786_vm0, %v3783_v7  ;;  %3549 = vmatpush3.bf16.msra.mxu1 %v2522_v42  ;;  %v2792_v57 = vsel %vm482_vm12, %v3141_v39, 0 }
0x1b28   :  { %3560 = vmatprep.subr.bf16.mxu1 %v3783_v7 }
0x1bdc   :  { %v2511_v15 = vpop.f32.mrf.mxu0 }
0x1bde   :  { %v3546_v16 = vpop.f32.mrf.mxu0 }
0x1be0   :  { %v2514_v21 = vpop.f32.mrf.mxu0 }
0x1be2   :  { %v3547_v22 = vpop.f32.mrf.mxu0 }
0x1be4   :  { %v2611_v26 = vpop.f32.mrf.mxu0 }
0x1be5   :  { %v2612_v27 = vadd.f32 %v2611_v26, %v3976_v44 }
0x1be6   :  { %v2463_v28 = vpop.f32.mrf.mxu1  ;;  %v3558_v29 = vpop.f32.mrf.mxu0 }
0x1be7   :  { %v2517_v31 = vpack.c.bf16 %v2511_v15, %v2463_v28  ;;  %v2667_v32 = vsel %vm357_vm11, %v2612_v27, -inf }
0x1be8   :  { %v3540_v30 = vpop.f32.mrf.mxu1  ;;  %2668 = vmax.xlane.f32.xlu0 %v2667_v32  ;;  %v2614_v33 = vpop.f32.mrf.mxu0 }
0x1be9   :  { %3551 = vmatmul.mubr.msk.bf16.vlgmr.msra.gmra.mxu1 %vm357_vm11, %v2517_v31 }
0x1bea   :  { %3561 = vmatpush3.bf16.xpose.msra.mxu1 %v2625_v34  ;;  %v2466_v36 = vpop.f32.mrf.mxu1  ;;  %v3559_v38 = vpop.f32.mrf.mxu0  ;;  %3562 = vmatprep.mubr.msk.bf16.mxu1 %vm3786_vm0, %v3783_v7  ;;  %v4476_v34 = vld [vmem:[%s4549_s11 + $0x8] sm:$0x3f] }
0x1beb   :  { %3572 = vmatprep.subr.bf16.mxu1 %v3783_v7  ;;  %v2840_v36 = vrot.slane %v4476_v34, %v3929_v8 }
0x1bec   :  { %v3541_v44 = vpop.f32.mrf.mxu1 }
0x1bf1   :  { %3563 = vmatmul.mubr.msk.bf16.vlgmr.msra.gmra.mxu1 %vm357_vm11, %v2618_v40 }
0x1bf2   :  { %3574 = vmatprep.mubr.msk.bf16.mxu1 %vm3786_vm0, %v3783_v7 }
0x1c71   :  { %v2669_v41 = vpop.xlane.xlu0 %2668 }
0x1c72   :  { %v2673_v43 = vsub.f32 %v2612_v27, %v2669_v41 }
0x1c74   :  { %v2675_v46 = vmul.f32 1.442695, %v2673_v43 }
0x1c76   :  { %3739 = vpow2.f32 %v2675_v46 }
0x1c83   :  { %v3740_v47 = vpop.eup %3739 }
0x1c84   :  { %v2679_v48 = vsel %vm357_vm11, %v3740_v47, 0.0 }
0x1c85   :  { %2680 = vadd.xlane.f32.xlu0 %v2679_v48 }
0x1ca9   :  { %v2558_v50 = vpop.f32.mrf.mxu1 }
0x1caa   :  { %v2565_v45 = vadd.f32 %v2558_v50, %v2291_v49 }
0x1cab   :  { %v3552_v51 = vpop.f32.mrf.mxu1 }
0x1cad   :  { %v2561_v61 = vpop.f32.mrf.mxu1 }
0x1cae   :  { %v2566_v62 = vadd.f32 %v2561_v61, %v2294_v54 }
0x1caf   :  { %v3553_v63 = vpop.f32.mrf.mxu1 }
0x1cb1   :  { %v2661_v0 = vpop.f32.mrf.mxu1 }
0x1cb2   :  { %v2662_v3 = vadd.f32 %v2661_v0, %v3981_v52 }
0x1cb3   :  { %v3564_v5 = vpop.f32.mrf.mxu1 }
0x1cb4   :  { %v2670_v1 = vsel %vm357_vm11, %v2662_v3, -inf }
0x1cb5   :  { %2671 = vmax.xlane.f32.xlu1 %v2670_v1  ;;  %v2664_v4 = vpop.f32.mrf.mxu1 }
0x1cb7   :  { %v3565_v9 = vpop.f32.mrf.mxu1 }
0x1cc6   :  { %2691 = vrot.lane.b32.xlu1 %v4266_v2, %s3798_s19 }
0x1d0e   :  { %v2681_v59 = vpop.xlane.xlu0 %2680 }
0x1d0f   :  { %3741 = vrcp.f32 %v2681_v59 }
0x1d1c   :  { %v3742_v35 = vpop.eup %3741 }
0x1d1d   :  { %v2687_v10 = vmul.f32 %v3742_v35, %v3740_v47 }
0x1d1f   :  { %v2689_v12 = vpack.c.bf16 %v2687_v10, %v2687_v10  ;;  %v2874_v10 = vrot.slane %v4476_v34, %v3936_v13  ;;  %v3664_v13 = vld [vmem:[%s4547_s9 + $0x30] sm:$0xff]  }
0x1d3e   :  { %v2672_v20 = vpop.xlane.xlu1 %2671 }
0x1d3f   :  { %v2674_v18 = vsub.f32 %v2662_v3, %v2672_v20 }
0x1d41   :  { %v2677_v37 = vmul.f32 1.442695, %v2674_v18 }
0x1d42   :  { %v2692_v11 = vpop.permute.xlu1 %2691 }
0x1d43   :  { %3743 = vpow2.f32 %v2677_v37  ;;  %v2697_v52 = vsel %vm482_vm12, %v2692_v11, 0 }
0x1d44   :  { %3567 = vmatpush3.bf16.msra.mxu0 %v2697_v52 }
0x1d45   :  { %3578 = vmatprep.subr.bf16.mxu0 %v3783_v7 }
0x1d47   :  { %3569 = vmatmul.mubr.msk.bf16.vlgmr.msra.gmra.mxu0 %vm357_vm11, %v2689_v12 }
0x1d48   :  { %3580 = vmatprep.mubr.msk.bf16.mxu0 %vm3786_vm0, %v3783_v7  ;;  %3579 = vmatpush3.bf16.msra.mxu0 %v2792_v57 }
0x1d49   :  { %3592 = vmatprep.subr.bf16.mxu0 %v3783_v7 }
0x1d50   :  { %v3744_v2 = vpop.eup %3743 }
0x1d51   :  { %v2682_v14 = vsel %vm357_vm11, %v3744_v2, 0.0 }
0x1d52   :  { %2683 = vadd.xlane.f32.xlu0 %v2682_v14 }
0x1d68   :  { %2739 = vrot.lane.b32.xlu0 %v4270_v19, %s3798_s19 }
0x1ddb   :  { %v2684_v42 = vpop.xlane.xlu0 %2683 }
0x1ddc   :  { %3745 = vrcp.f32 %v2684_v42 }
0x1ddf   :  { %v2740_v15 = vpop.permute.xlu0 %2739 }
0x1de0   :  { %v2745_v16 = vsel %vm482_vm12, %v2740_v15, 0  ;;  %v3663_v15 = vld [vmem:[%s4547_s9 + $0x38] sm:$0xff]  }
0x1de1   :  { %3573 = vmatpush3.bf16.msra.mxu1 %v2745_v16  ;;  %v3666_v16 = vld [vmem:[%s4547_s9 + $0x20] sm:$0xff]  }
0x1de2   :  { %3584 = vmatprep.subr.bf16.mxu1 %v3783_v7 }
0x1de9   :  { %v3746_v21 = vpop.eup %3745 }
0x1dea   :  { %v2688_v22 = vmul.f32 %v3746_v21, %v3744_v2  ;;  %v2880_v2 = vrot.slane %v4476_v34, %v1472_v17  ;;  %v3665_v17 = vld [vmem:[%s4547_s9 + $0x28] sm:$0xff]   ;;  %v3180_v21 = vld [vmem:[%s4548_s10 + $0x1] ss:$0 sm:$0xff]  ;;  %s3799_s9 = smov [#allocation2]  }
0x1deb   :  { %s3076_s10 = sshll.u32 %s3799_s9, 4  ;;  %s3077_s10 = int_to_ptr.vmem [resolvable:$true] %s3076_s10 }
0x1dec   :  { %v2690_v19 = vpack.c.bf16 %v2688_v22, %v2688_v22  ;;  %s3759_s2 = scalar_lea.vmem %s3077_s10, 256  ;;  %p3764_p1 = scmp.lt.s32.totalorder %s3077_s10, %s3077_s10 }
0x1ded   :  { %p3760_p0 = scmp.ne.s32.totalorder %s3077_s10, %s3759_s2  ;;  %p3765_p2 = scmp.lt.s32.totalorder %s3759_s2, %s3759_s2 }
0x1dee   :  { %3575 = vmatmul.mubr.msk.bf16.vlgmr.msra.gmra.mxu1 %vm357_vm11, %v2690_v19 }
0x1def   :  { %3588 = vmatprep.mubr.msk.bf16.mxu1 %vm3786_vm0, %v3783_v7  ;;  %3585 = vmatpush3.bf16.msra.mxu1 %v3661_v56  ;;  %p3766_p3 = por %p3765_p2, %p3764_p1 }
0x1df0   :  { %3586 = vmatprep.subr.bf16.mxu1 %v3783_v7 }
0x1df1   :  { %p3767_p4 = pnand %p3766_p3, %p3760_p0 }
0x1e07   :  { %v2733_v26 = vpop.f32.mrf.mxu0 }
0x1e09   :  { %v3570_v25 = vpop.f32.mrf.mxu0 }
0x1e0b   :  { %v2736_v27 = vpop.f32.mrf.mxu0 }
0x1e0d   :  { %v3571_v28 = vpop.f32.mrf.mxu0 }
0x1eae   :  { %v2781_v29 = vpop.f32.mrf.mxu1 }
0x1eaf   :  { %v2787_v31 = vpack.c.bf16 %v2781_v29, %v2733_v26 }
0x1eb0   :  { %v3576_v32 = vpop.f32.mrf.mxu1 }
0x1eb1   :  { %3581 = vmatmul.mubr.msk.bf16.vlgmr.msra.gmra.mxu0 %vm357_vm11, %v2787_v31 }
0x1eb2   :  { %v2784_v30 = vpop.f32.mrf.mxu1  ;;  %3600 = vmatprep.mubr.msk.bf16.mxu0 %vm3786_vm0, %v3783_v7  ;;  %3593 = vmatpush3.bf16.msra.mxu0 %v3663_v15 }
0x1eb3   :  { %3594 = vmatprep.subr.bf16.mxu0 %v3783_v7 }
0x1eb4   :  { %v3577_v33 = vpop.f32.mrf.mxu1 }
0x1eb6   :  { %3595 = vmatpush3.bf16.msra.mxu0 %v3664_v13 }
0x1eb7   :  { %3596 = vmatprep.subr.bf16.mxu0 %v3783_v7 }
0x1eba   :  { %3597 = vmatpush3.bf16.msra.mxu0 %v3665_v17 }
0x1ebb   :  { %3598 = vmatprep.subr.bf16.mxu0 %v3783_v7 }
0x1ebe   :  { %3599 = vmatpush3.bf16.msra.mxu0 %v3666_v16 }
0x1f71   :  { %v2828_v38 = vpop.f32.mrf.mxu0 }
0x1f72   :  { %v2835_v44 = vadd.f32 %v2828_v38, %v2565_v45 }
0x1f73   :  { %v3582_v40 = vpop.f32.mrf.mxu0 }
0x1f74   :  { %v2841_v41 = vadd.f32 %v2840_v36, %v2835_v44 }
0x1f75   :  { %v2831_v43 = vpop.f32.mrf.mxu0 }
0x1f76   :  { %v2836_v46 = vadd.f32 %v2831_v43, %v2566_v62  ;;  %v2843_v47 = vadd.f32 %v2841_v41, %v1666_v58  ;;  %v2960_v43 = vrot.slane %v4476_v34, %v1552_v55 }
0x1f77   :  { %v3583_v48 = vpop.f32.mrf.mxu0 }
0x1f78   :  { %v2842_v49 = vadd.f32 %v2840_v36, %v2836_v46  ;;  %v2845_v50 = vsel %vm190_vm10, %v2843_v47, 0.0 }
0x1f79   :  { %2846 = vadd.xlane.f32.xlu1 %v2845_v50 }
0x1f7a   :  { %v2844_v51 = vadd.f32 %v2842_v49, %v1667_v60  ;;  %v3662_v60 = vld [vmem:[%s4546_s8 + $0x10] sm:$0xff]  }
0x1f7b   :  { %3587 = vmatpush3.bf16.msra.mxu1 %v3662_v60 }
0x1f7c   :  { %v2848_v54 = vsel %vm190_vm10, %v2844_v51, 0.0 }
0x1f7d   :  { %2849 = vadd.xlane.f32.xlu0 %v2848_v54 }
0x2002   :  { %v2847_v8 = vpop.xlane.xlu1 %2846 }
0x2003   :  { %v2851_v45 = vmul.f32 0.03125, %v2847_v8 }
0x2005   :  { %v2853_v61 = vsub.f32 %v2843_v47, %v2851_v45 }
0x2006   :  { %v2850_v63 = vpop.xlane.xlu0 %2849 }
0x2007   :  { %v2852_v0 = vmul.f32 0.03125, %v2850_v63  ;;  %v2855_v62 = vmul.f32 %v2853_v61, %v2853_v61 }
0x2009   :  { %v2854_v3 = vsub.f32 %v2844_v51, %v2852_v0  ;;  %v2857_v53 = vsel %vm190_vm10, %v2855_v62, 0.0 }
0x200a   :  { %2858 = vadd.xlane.f32.xlu1 %v2857_v53 }
0x200b   :  { %v2856_v58 = vmul.f32 %v2854_v3, %v2854_v3 }
0x200d   :  { %v2860_v5 = vsel %vm190_vm10, %v2856_v58, 0.0 }
0x200e   :  { %2861 = vadd.xlane.f32.xlu0 %v2860_v5 }
0x2093   :  { %v2859_v1 = vpop.xlane.xlu1 %2858 }
0x2094   :  { %v2863_v4 = vmul.f32 0.03125, %v2859_v1 }
0x2096   :  { %v2865_v9 = vadd.f32 1e-12, %v2863_v4 }
0x2097   :  { %v2862_v59 = vpop.xlane.xlu0 %2861 }
0x2098   :  { %3747 = vrsqrt.f32 %v2865_v9  ;;  %v2864_v35 = vmul.f32 0.03125, %v2862_v59 }
0x209a   :  { %v2866_v20 = vadd.f32 1e-12, %v2864_v35 }
0x209c   :  { %3749 = vrsqrt.f32 %v2866_v20 }
0x20a5   :  { %v3748_v18 = vpop.eup %3747 }
0x20a6   :  { %v2869_v37 = vmul.f32 %v3748_v18, %v2853_v61  ;;  %v3060_v18 = vrot.slane %v4476_v34, %v1652_v23 }
0x20a8   :  { %v2875_v12 = vmul.f32 %v2874_v10, %v2869_v37 }
0x20a9   :  { %v3750_v11 = vpop.eup %3749 }
0x20aa   :  { %v2870_v52 = vmul.f32 %v3750_v11, %v2854_v3  ;;  %v2881_v39 = vadd.f32 %v2880_v2, %v2875_v12  ;;  %v3066_v11 = vrot.slane %v4476_v34, %v1658_v24 }
0x20ac   :  { %v2876_v14 = vmul.f32 %v2874_v10, %v2870_v52 }
0x20ae   :  { %v2882_v57 = vadd.f32 %v2880_v2, %v2876_v14 }
0x20b0   :  { %v2883_v42 = vpack.c.bf16 %v2882_v57, %v2881_v39 }
0x20b2   :  { %3589 = vmatmul.mubr.msk.bf16.vlgmr.msra.gmra.mxu1 %vm190_vm10, %v2883_v42 }
0x2172   :  { %v2939_v22 = vpop.f32.mrf.mxu1 }
0x2173   :  { %v2940_v19 = vadd.f32 %v3180_v21, %v2939_v22 }
0x2174   :  { %v3590_v26 = vpop.f32.mrf.mxu1 }
0x2175   :  { %v2948_v25 = vmul.f32 0.70710677, %v2940_v19  ;;  %v2946_v33 = vmul.f32 0.5, %v2940_v19 }
0x2176   :  { %v2942_v27 = vpop.f32.mrf.mxu1 }
0x2177   :  { %3751 = verf.f32 %v2948_v25  ;;  %v2943_v28 = vadd.f32 %v3180_v21, %v2942_v27 }
0x2178   :  { %v3591_v29 = vpop.f32.mrf.mxu1 }
0x2179   :  { %v2949_v31 = vmul.f32 0.70710677, %v2943_v28  ;;  %v2947_v36 = vmul.f32 0.5, %v2943_v28 }
0x217b   :  { %3753 = verf.f32 %v2949_v31 }
0x2184   :  { %v3752_v7 = vpop.eup %3751 }
0x2185   :  { %v2952_v32 = vadd.f32 1.0, %v3752_v7 }
0x2187   :  { %v2954_v44 = vmul.f32 %v2952_v32, %v2946_v33 }
0x2188   :  { %v3754_v30 = vpop.eup %3753 }
0x2189   :  { %v2953_v38 = vadd.f32 1.0, %v3754_v30 }
0x218b   :  { %v2955_v40 = vmul.f32 %v2953_v38, %v2947_v36 }
0x218d   :  { %v2956_v41 = vpack.c.bf16 %v2955_v40, %v2954_v44 }
0x218f   :  { %3601 = vmatmul.mubr.msk.bf16.vlgmr.msra.gmra.mxu0 %vm145_vm9, %v2956_v41 }
0x224f   :  { %v3022_v46 = vpop.f32.mrf.mxu0 }
0x2250   :  { %v3023_v47 = vadd.f32 %v3022_v46, %v2960_v43 }
0x2251   :  { %v3602_v48 = vpop.f32.mrf.mxu0 }
0x2252   :  { %v3029_v49 = vadd.f32 %v3023_v47, %v2881_v39 }
0x2253   :  { %v3025_v50 = vpop.f32.mrf.mxu0 }
0x2254   :  { %v3026_v51 = vadd.f32 %v3025_v50, %v2960_v43  ;;  %v3031_v54 = vsel %vm190_vm10, %v3029_v49, 0.0 }
0x2255   :  { %3032 = vadd.xlane.f32.xlu1 %v3031_v54  ;;  %v3603_v8 = vpop.f32.mrf.mxu0 }
0x2256   :  { %v3030_v45 = vadd.f32 %v3026_v51, %v2882_v57 }
0x2258   :  { %v3034_v61 = vsel %vm190_vm10, %v3030_v45, 0.0 }
0x2259   :  { %3035 = vadd.xlane.f32.xlu0 %v3034_v61 }
0x22de   :  { %v3033_v63 = vpop.xlane.xlu1 %3032 }
0x22df   :  { %v3037_v0 = vmul.f32 0.03125, %v3033_v63 }
0x22e1   :  { %v3039_v62 = vsub.f32 %v3029_v49, %v3037_v0 }
0x22e2   :  { %v3036_v3 = vpop.xlane.xlu0 %3035 }
0x22e3   :  { %v3038_v53 = vmul.f32 0.03125, %v3036_v3  ;;  %v3041_v55 = vmul.f32 %v3039_v62, %v3039_v62 }
0x22e5   :  { %v3040_v58 = vsub.f32 %v3030_v45, %v3038_v53  ;;  %v3043_v5 = vsel %vm190_vm10, %v3041_v55, 0.0 }
0x22e6   :  { %3044 = vadd.xlane.f32.xlu1 %v3043_v5 }
0x22e7   :  { %v3042_v56 = vmul.f32 %v3040_v58, %v3040_v58 }
0x22e9   :  { %v3046_v60 = vsel %vm190_vm10, %v3042_v56, 0.0 }
0x22ea   :  { %3047 = vadd.xlane.f32.xlu0 %v3046_v60 }
0x236f   :  { %v3045_v1 = vpop.xlane.xlu1 %3044 }
0x2370   :  { %v3049_v4 = vmul.f32 0.03125, %v3045_v1 }
0x2372   :  { %v3051_v9 = vadd.f32 1e-12, %v3049_v4 }
0x2373   :  { %v3048_v59 = vpop.xlane.xlu0 %3047 }
0x2374   :  { %3755 = vrsqrt.f32 %v3051_v9  ;;  %v3050_v35 = vmul.f32 0.03125, %v3048_v59 }
0x2376   :  { %v3052_v20 = vadd.f32 1e-12, %v3050_v35 }
0x2378   :  { %3757 = vrsqrt.f32 %v3052_v20 }
0x2381   :  { %v3756_v37 = vpop.eup %3755 }
0x2382   :  { %v3055_v10 = vmul.f32 %v3756_v37, %v3039_v62 }
0x2384   :  { %v3061_v52 = vmul.f32 %v3060_v18, %v3055_v10 }
0x2385   :  { %v3758_v12 = vpop.eup %3757 }
0x2386   :  { %v3056_v2 = vmul.f32 %v3758_v12, %v3040_v58  ;;  %v3067_v14 = vadd.f32 %v3066_v11, %v3061_v52 }
0x2388   :  { %v3062_v39 = vmul.f32 %v3060_v18, %v3056_v2  ;;  %3069 = vst.msk [vmem:[#allocation2] sm:$0xff] %vm190_vm10, %v3067_v14 }
0x238a   :  { %v3068_v57 = vadd.f32 %v3066_v11, %v3062_v39 }
0x238c   :  { %3070 = vst.msk [vmem:[#allocation2 + $0x8] sm:$0xff] %vm190_vm10, %v3068_v57 }
0x238d   :  { %3770 = shalt.err (!%p3767_p4)
}
0x238e   :  { %s3800_s14 = smov 128   ;;  %s3801_s5 = smov 8  }
0x238f   :  { %3082 = dma.vmem_to_hbm [thread:$0]  %s3077_s10, 256, %s4550_s12, [#allocation3], %s3800_s14, %s3800_s14, %s3801_s5  }
0x2390   :  { %3779 = dma.done.wait [#allocation3], 256  }
0x2391   :  { %3780 = vsyncadd [#allocation3], 4294967040 }
0x2392   :  { %3086 = vsyncpa [#allocation3], 1 }

</bundles_post_ra>
